<compile_context>
chip_gen: v6e
topology: v6e:2x2x1
jax: 0.10.0
libtpu: 0.0.40
codegen_flags: <defaults>
</compile_context>

<pallas_src>
import math
import jax
import jax.numpy as jnp
from jax import lax
from jax.experimental import pallas as pl
from jax.experimental.pallas import tpu as pltpu


# ----------------------------------------------------------------------------
# helpers
# ----------------------------------------------------------------------------
def _round_up(x, m):
    return ((x + m - 1) // m) * m


def _pick_divisor_tile(n, target=256, multiple=8):
    """Largest divisor of n that is <= target and a multiple of `multiple`;
    falls back to n (single full tile)."""
    if n <= target:
        return n
    t = (target // multiple) * multiple
    while t >= multiple:
        if n % t == 0:
            return t
        t -= multiple
    # TODO(synk): pad the query axis instead of a single full tile for awkward L.
    return n


def patching_unfold(x, B, T, C, pn_h, pn_w, ps_h, ps_w):
    """STTN-style UNFOLD patching: (B*T, C, H, W) -> (B, L, C*ps_h*ps_w)."""
    x = x.reshape(B, T, C, pn_h, ps_h, pn_w, ps_w)
    x = jnp.transpose(x, (0, 1, 3, 5, 2, 4, 6))  # (B, T, pn_h, pn_w, C, ps_h, ps_w)
    return x.reshape(B, T * pn_h * pn_w, C * ps_h * ps_w)


# ----------------------------------------------------------------------------
# Fused projection + attention kernel
# ----------------------------------------------------------------------------
def _make_fused_kernel(need_weights):
    def kernel(xq_ref, xc_ref, wq_ref, bq_ref, wk_ref, bk_ref,
               wv_ref, bv_ref, bo_ref, *rest):
        if need_weights:
            out_ref, attn_ref, k_scr, v_scr = rest
        else:
            out_ref, k_scr, v_scr = rest
            attn_ref = None

        t = pl.program_id(1)

        # Project K and V once per batch (q-tile axis is the inner, "arbitrary"
        # grid axis, so the scratch persists across q-tiles of the same batch).
        @pl.when(t == 0)
        def _project_kv():
            k = (jnp.dot(xc_ref[...], wk_ref[...],
                         preferred_element_type=jnp.float32) + bk_ref[...])
            v = (jnp.dot(xc_ref[...], wv_ref[...],
                         preferred_element_type=jnp.float32) + bv_ref[...])
            k_scr[...] = k.astype(jnp.bfloat16)
            v_scr[...] = v.astype(jnp.bfloat16)   # out_proj already folded into wv

        # Q projection for this q-tile (1/sqrt(E) scale folded into wq/bq).
        qp = (jnp.dot(xq_ref[...], wq_ref[...],
                      preferred_element_type=jnp.float32) + bq_ref[...])

        # scores = qp @ K^T without materializing the transpose.
        scores = lax.dot_general(
            qp.astype(jnp.bfloat16), k_scr[...],
            dimension_numbers=(((1,), (1,)), ((), ())),
            preferred_element_type=jnp.float32)                     # (lq, L)

        scores = scores - jnp.max(scores, axis=-1, keepdims=True)
        p = jnp.exp(scores)
        inv = pl.reciprocal(jnp.sum(p, axis=-1, keepdims=True), approx=False)
        attn = p * inv                                               # f32, exact

        out_ref[...] = (jnp.dot(attn.astype(jnp.bfloat16), v_scr[...],
                                preferred_element_type=jnp.float32)
                        + bo_ref[...])
        if need_weights:
            attn_ref[...] = attn

    return kernel


# ----------------------------------------------------------------------------
# Module wrapper
# ----------------------------------------------------------------------------
class PatchTransformerPallas:
    def __init__(self, length, encoding_w, encoding_h, encoding_dim,
                 patch_size_w, patch_size_h, sub_embedding_dim, key):
        self.length = length
        self.encoding_w = encoding_w
        self.encoding_h = encoding_h
        self.encoding_dim = encoding_dim
        self.ps_w = patch_size_w
        self.ps_h = patch_size_h
        self.pn_w = encoding_w // patch_size_w
        self.pn_h = encoding_h // patch_size_h
        self.sub_dim = sub_embedding_dim
        self.mid_dim = sub_embedding_dim * patch_size_w * patch_size_h

        ks = jax.random.split(key, 10)
        s_conv = 1.0 / math.sqrt(encoding_dim)
        s_lin = 1.0 / math.sqrt(self.mid_dim)
        # 1x1 conv embeddings (Conv2d weights stored as (Cout, Cin))
        self.wq_conv = jax.random.normal(ks[0], (sub_embedding_dim, encoding_dim), jnp.float32) * s_conv
        self.bq_conv = jax.random.normal(ks[1], (sub_embedding_dim,), jnp.float32) * s_conv
        self.wk_conv = jax.random.normal(ks[2], (sub_embedding_dim, encoding_dim), jnp.float32) * s_conv
        self.bk_conv = jax.random.normal(ks[3], (sub_embedding_dim,), jnp.float32) * s_conv
        self.wv_conv = jax.random.normal(ks[4], (sub_embedding_dim, encoding_dim), jnp.float32) * s_conv
        self.bv_conv = jax.random.normal(ks[5], (sub_embedding_dim,), jnp.float32) * s_conv
        # nn.MultiheadAttention(mid_dim, num_heads=1) parameters
        self.in_proj_w = jax.random.normal(ks[6], (3 * self.mid_dim, self.mid_dim), jnp.float32) * s_lin
        self.in_proj_b = jax.random.normal(ks[7], (3 * self.mid_dim,), jnp.float32) * s_lin
        self.out_proj_w = jax.random.normal(ks[8], (self.mid_dim, self.mid_dim), jnp.float32) * s_lin
        self.out_proj_b = jax.random.normal(ks[9], (self.mid_dim,), jnp.float32) * s_lin

        self._precompute_fused_weights()

    def _precompute_fused_weights(self):
        """Compose conv1x1 -> unfold -> in_proj (-> out_proj for V) into single
        matrices host-side.  Unfold feature order is (channel, ps_h, ps_w), so a
        1x1 conv acting on unfolded rows is kron(W_conv, I_{ps_h*ps_w}).  The
        1/sqrt(E) scale is folded into Q; the out_proj weight into V.  Weights
        are stored transposed, zero-padded to a 128-multiple Din, in bf16."""
        E = self.mid_dim
        ps = self.ps_h * self.ps_w
        Din = self.encoding_dim * ps
        Dp = _round_up(Din, 128)
        self.din = Din
        self.din_pad = Dp

        eye_ps = jnp.eye(ps, dtype=jnp.float32)
        Mq = jnp.kron(self.wq_conv, eye_ps)      # (E, Din)
        Mk = jnp.kron(self.wk_conv, eye_ps)
        Mv = jnp.kron(self.wv_conv, eye_ps)
        bq_t = jnp.repeat(self.bq_conv, ps)      # (E,)
        bk_t = jnp.repeat(self.bk_conv, ps)
        bv_t = jnp.repeat(self.bv_conv, ps)

        wq_in, wk_in, wv_in = jnp.split(self.in_proj_w, 3, axis=0)
        bq_in, bk_in, bv_in = jnp.split(self.in_proj_b, 3, axis=0)

        scale = 1.0 / math.sqrt(E)
        Wq = (wq_in @ Mq) * scale                          # (E, Din), scale folded
        bq = (wq_in @ bq_t + bq_in) * scale
        Wk = wk_in @ Mk
        bk = wk_in @ bk_t + bk_in
        Wv = self.out_proj_w @ (wv_in @ Mv)                # out_proj folded into V
        bv = self.out_proj_w @ (wv_in @ bv_t + bv_in)

        def pad_t(W):                                      # (E, Din) -> (Dp, E) bf16
            Wt = W.T
            if Dp != Din:
                Wt = jnp.pad(Wt, ((0, Dp - Din), (0, 0)))  # zero rows are free
            return Wt.astype(jnp.bfloat16)

        self.wq_t = pad_t(Wq)
        self.wk_t = pad_t(Wk)
        self.wv_t = pad_t(Wv)
        self.bq_row = bq.reshape(1, E).astype(jnp.float32)
        self.bk_row = bk.reshape(1, E).astype(jnp.float32)
        self.bv_row = bv.reshape(1, E).astype(jnp.float32)
        self.bo_row = self.out_proj_b.reshape(1, E).astype(jnp.float32)

    # ------------------------------------------------------------------
    def _run_fused(self, Xq_p, Xc_p, need_weights, single_buffer_weights):
        B, L, Dp = Xq_p.shape
        E = self.mid_dim
        lq = _pick_divisor_tile(L, target=256, multiple=8)
        nqt = L // lq

        use_buf = single_buffer_weights and hasattr(pl, "Buffered")

        def const_spec(shape):
            imap = lambda b, t: (0, 0)
            if use_buf:
                # Constant-index resident blocks: single buffer (no point
                # double-buffering something that never changes).
                return pl.BlockSpec(shape, imap, pipeline_mode=pl.Buffered(1))
            return pl.BlockSpec(shape, imap)

        in_specs = [
            pl.BlockSpec((None, lq, Dp), lambda b, t: (b, t, 0)),   # Xq q-tile
            pl.BlockSpec((None, L, Dp), lambda b, t: (b, 0, 0)),    # Xc full batch
            const_spec((Dp, E)),    # wq (scale folded)
            const_spec((1, E)),     # bq
            const_spec((Dp, E)),    # wk
            const_spec((1, E)),     # bk
            const_spec((Dp, E)),    # wv (out_proj folded)
            const_spec((1, E)),     # bv
            const_spec((1, E)),     # bo
        ]
        out_specs = [pl.BlockSpec((None, lq, E), lambda b, t: (b, t, 0))]
        out_shape = [jax.ShapeDtypeStruct((B, L, E), jnp.float32)]
        if need_weights:
            out_specs.append(pl.BlockSpec((None, lq, L), lambda b, t: (b, t, 0)))
            out_shape.append(jax.ShapeDtypeStruct((B, L, L), jnp.float32))

        fn = pl.pallas_call(
            _make_fused_kernel(need_weights),
            grid=(B, nqt),
            in_specs=in_specs,
            out_specs=out_specs,
            out_shape=out_shape,
            scratch_shapes=[pltpu.VMEM((L, E), jnp.bfloat16),   # K (per batch)
                            pltpu.VMEM((L, E), jnp.bfloat16)],  # V (per batch)
            compiler_params=pltpu.CompilerParams(
                dimension_semantics=("parallel", "arbitrary"),
                vmem_limit_bytes=48 * 1024 * 1024),
        )
        res = fn(Xq_p, Xc_p, self.wq_t, self.bq_row, self.wk_t, self.bk_row,
                 self.wv_t, self.bv_row, self.bo_row)
        if need_weights:
            return res[0], res[1]
        return res[0], None

    def _fused_attention(self, Xq_p, Xc_p, need_weights):
        try:
            return self._run_fused(Xq_p, Xc_p, need_weights,
                                   single_buffer_weights=True)
        except Exception:
            # pl.Buffered(1) not supported on this jax version -> default buffering.
            return self._run_fused(Xq_p, Xc_p, need_weights,
                                   single_buffer_weights=False)

    # ------------------------------------------------------------------
    def __call__(self, c, q, mask=None, need_weights=True):
        # mask is ignored on the is_mask=0 path (matches the PyTorch default).
        B_T = c.shape[0]
        T = self.length
        B = B_T // T
        C = c.shape[1]
        Din = C * self.ps_h * self.ps_w
        Dp = self.din_pad

        # Unfold the RAW inputs (no conv round-trip through HBM); the zero-pad
        # to the 128-aligned feature dim and the bf16 cast fuse into the same
        # layout copy.
        Xq = patching_unfold(q, B, T, C, self.pn_h, self.pn_w, self.ps_h, self.ps_w)
        Xc = patching_unfold(c, B, T, C, self.pn_h, self.pn_w, self.ps_h, self.ps_w)
        if Dp != Din:
            Xq = jnp.pad(Xq, ((0, 0), (0, 0), (0, Dp - Din)))
            Xc = jnp.pad(Xc, ((0, 0), (0, 0), (0, Dp - Din)))
        Xq = Xq.astype(jnp.bfloat16)
        Xc = Xc.astype(jnp.bfloat16)

        out, attn_w = self._fused_attention(Xq, Xc, need_weights)

        # same flat reshape as the PyTorch module: (B_T, -1, encoding_h, encoding_w)
        x = out.reshape(B_T, -1, self.encoding_h, self.encoding_w)
        return x, attn_w


# ----------------------------------------------------------------------------
# Pure-JAX f32 reference (un-fused, mirrors PyTorch math; correctness check only)
# ----------------------------------------------------------------------------
def reference_forward(m, c, q):
    def conv(x, w, b):
        return jnp.einsum('nchw,oc->nohw', x, w) + b[None, :, None, None]

    B_T = c.shape[0]
    T = m.length
    B = B_T // T
    Qe = conv(q, m.wq_conv, m.bq_conv)
    Ke = conv(c, m.wk_conv, m.bk_conv)
    Ve = conv(c, m.wv_conv, m.bv_conv)
    Csub = Qe.shape[1]
    Qp = patching_unfold(Qe, B, T, Csub, m.pn_h, m.pn_w, m.ps_h, m.ps_w)
    Kp = patching_unfold(Ke, B, T, Csub, m.pn_h, m.pn_w, m.ps_h, m.ps_w)
    Vp = patching_unfold(Ve, B, T, Csub, m.pn_h, m.pn_w, m.ps_h, m.ps_w)

    wq, wk, wv = jnp.split(m.in_proj_w, 3, axis=0)
    bq, bk, bv = jnp.split(m.in_proj_b, 3, axis=0)
    E = m.mid_dim
    qp = Qp @ wq.T + bq
    kp = Kp @ wk.T + bk
    vp = Vp @ wv.T + bv
    scores = (qp / math.sqrt(E)) @ jnp.swapaxes(kp, -1, -2)
    attn = jax.nn.softmax(scores, axis=-1)
    ctx = attn @ vp
    out = ctx @ m.out_proj_w.T + m.out_proj_b
    x = out.reshape(B_T, -1, m.encoding_h, m.encoding_w)
    return x, attn


if __name__ == "__main__":
    key = jax.random.PRNGKey(0)
    k_c, k_q, k_m = jax.random.split(key, 3)

    T, B = 2, 2
    B_T = B * T
    enc_dim = 4
    enc_h = enc_w = 8
    ps_h = ps_w = 4
    sub_dim = 8  # mid_dim = 8*4*4 = 128

    c = jax.random.normal(k_c, (B_T, enc_dim, enc_h, enc_w), jnp.float32)
    q = jax.random.normal(k_q, (B_T, enc_dim, enc_h, enc_w), jnp.float32)

    model = PatchTransformerPallas(T, enc_w, enc_h, enc_dim, ps_w, ps_h, sub_dim, k_m)

    x, attn = model(c, q)
    jax.block_until_ready((x, attn))

    # also exercise the need_weights=False fast path (attn-map store skipped)
    x_nw, attn_nw = model(c, q, need_weights=False)
    jax.block_until_ready(x_nw)

    x_ref, attn_ref = reference_forward(model, c, q)
    L = T * (enc_h // ps_h) * (enc_w // ps_w)
    assert x.shape == (B_T, sub_dim, enc_h, enc_w), x.shape
    assert attn.shape == (B, L, L), attn.shape
    assert attn_nw is None
    # tolerance loosened vs f32-exact: matmuls use bf16 MXU operands
    # (f32 accumulation); the f32 reference is the gold value.
    assert jnp.allclose(x, x_ref, atol=5e-2, rtol=5e-2), float(jnp.max(jnp.abs(x - x_ref)))
    assert jnp.allclose(attn, attn_ref, atol=5e-2, rtol=5e-2), float(jnp.max(jnp.abs(attn - attn_ref)))
    assert jnp.allclose(x_nw, x_ref, atol=5e-2, rtol=5e-2), float(jnp.max(jnp.abs(x_nw - x_ref)))

    print("KERNEL_OK")
</pallas_src>

<mosaic_0001>
module attributes {stable_mosaic.version = 11 : i64} {
  func.func @kernel(%arg0: i32, %arg1: i32, %arg2: memref<1x8x128xbf16, #tpu.memory_space<vmem>>, %arg3: memref<1x8x128xbf16, #tpu.memory_space<vmem>>, %arg4: memref<128x128xbf16, #tpu.memory_space<vmem>>, %arg5: memref<1x128xf32, #tpu.memory_space<vmem>>, %arg6: memref<128x128xbf16, #tpu.memory_space<vmem>>, %arg7: memref<1x128xf32, #tpu.memory_space<vmem>>, %arg8: memref<128x128xbf16, #tpu.memory_space<vmem>>, %arg9: memref<1x128xf32, #tpu.memory_space<vmem>>, %arg10: memref<1x128xf32, #tpu.memory_space<vmem>>, %arg11: memref<1x8x128xf32, #tpu.memory_space<vmem>>, %arg12: memref<1x8x8xf32, #tpu.memory_space<vmem>>, %arg13: memref<8x128xbf16, #tpu.memory_space<vmem>>, %arg14: memref<8x128xbf16, #tpu.memory_space<vmem>>) attributes {dimension_semantics = [#tpu.dimension_semantics<parallel>, #tpu.dimension_semantics<arbitrary>], iteration_bounds = array<i64: 2, 1>, scalar_prefetch = 0 : i64, scratch_operands = 2 : i64, tpu.core_type = #tpu.core_type<tc>, window_params = [{transform_indices = @transform_0, window_bounds = array<i64: 1, 8, 128>}, {transform_indices = @transform_1, window_bounds = array<i64: 1, 8, 128>}, {pipeline_mode = #tpu.pipeline_mode<synchronous>, transform_indices = @transform_2, window_bounds = array<i64: 128, 128>}, {pipeline_mode = #tpu.pipeline_mode<synchronous>, transform_indices = @transform_3, window_bounds = array<i64: 1, 128>}, {pipeline_mode = #tpu.pipeline_mode<synchronous>, transform_indices = @transform_4, window_bounds = array<i64: 128, 128>}, {pipeline_mode = #tpu.pipeline_mode<synchronous>, transform_indices = @transform_5, window_bounds = array<i64: 1, 128>}, {pipeline_mode = #tpu.pipeline_mode<synchronous>, transform_indices = @transform_6, window_bounds = array<i64: 128, 128>}, {pipeline_mode = #tpu.pipeline_mode<synchronous>, transform_indices = @transform_7, window_bounds = array<i64: 1, 128>}, {pipeline_mode = #tpu.pipeline_mode<synchronous>, transform_indices = @transform_8, window_bounds = array<i64: 1, 128>}, {transform_indices = @transform_9, window_bounds = array<i64: 1, 8, 128>}, {transform_indices = @transform_10, window_bounds = array<i64: 1, 8, 8>}]} {
    %c0_i32 = arith.constant 0 : i32
    %0 = arith.cmpi eq, %arg1, %c0_i32 : i32
    %1 = arith.extui %0 : i1 to i32
    %c0_i32_0 = arith.constant 0 : i32
    %2 = arith.cmpi ne, %1, %c0_i32_0 : i32
    scf.if %2 {
      %c0_23 = arith.constant 0 : index
      %c0_24 = arith.constant 0 : index
      %c0_25 = arith.constant 0 : index
      %35 = vector.load %arg3[%c0_23, %c0_24, %c0_25] : memref<1x8x128xbf16, #tpu.memory_space<vmem>>, vector<1x8x128xbf16>
      %36 = vector.shape_cast %35 : vector<1x8x128xbf16> to vector<8x128xbf16>
      %c0_26 = arith.constant 0 : index
      %c0_27 = arith.constant 0 : index
      %37 = vector.load %arg6[%c0_26, %c0_27] : memref<128x128xbf16, #tpu.memory_space<vmem>>, vector<128x128xbf16>
      %cst_28 = arith.constant dense<0.000000e+00> : vector<8x128xf32>
      %38 = tpu.matmul %36, %37, %cst_28 {dimension_numbers = #tpu.dot_dimension_numbers<[1], [0], [0], [1], [0, 0, 1, 1], [], []>} : vector<8x128xbf16>, vector<128x128xbf16>, vector<8x128xf32> -> vector<8x128xf32>
      %c0_29 = arith.constant 0 : index
      %c0_30 = arith.constant 0 : index
      %39 = vector.load %arg7[%c0_29, %c0_30] : memref<1x128xf32, #tpu.memory_space<vmem>>, vector<1x128xf32>
      %40 = vector.broadcast %39 : vector<1x128xf32> to vector<8x128xf32>
      %41 = arith.addf %38, %40 : vector<8x128xf32>
      %c0_31 = arith.constant 0 : index
      %c0_32 = arith.constant 0 : index
      %c0_33 = arith.constant 0 : index
      %42 = vector.load %arg3[%c0_31, %c0_32, %c0_33] : memref<1x8x128xbf16, #tpu.memory_space<vmem>>, vector<1x8x128xbf16>
      %43 = vector.shape_cast %42 : vector<1x8x128xbf16> to vector<8x128xbf16>
      %c0_34 = arith.constant 0 : index
      %c0_35 = arith.constant 0 : index
      %44 = vector.load %arg8[%c0_34, %c0_35] : memref<128x128xbf16, #tpu.memory_space<vmem>>, vector<128x128xbf16>
      %cst_36 = arith.constant dense<0.000000e+00> : vector<8x128xf32>
      %45 = tpu.matmul %43, %44, %cst_36 {dimension_numbers = #tpu.dot_dimension_numbers<[1], [0], [0], [1], [0, 0, 1, 1], [], []>} : vector<8x128xbf16>, vector<128x128xbf16>, vector<8x128xf32> -> vector<8x128xf32>
      %c0_37 = arith.constant 0 : index
      %c0_38 = arith.constant 0 : index
      %46 = vector.load %arg9[%c0_37, %c0_38] : memref<1x128xf32, #tpu.memory_space<vmem>>, vector<1x128xf32>
      %47 = vector.broadcast %46 : vector<1x128xf32> to vector<8x128xf32>
      %48 = arith.addf %45, %47 : vector<8x128xf32>
      %49 = arith.truncf %41 : vector<8x128xf32> to vector<8x128xbf16>
      %c0_39 = arith.constant 0 : index
      %c0_40 = arith.constant 0 : index
      %50 = vector.load %arg13[%c0_39, %c0_40] : memref<8x128xbf16, #tpu.memory_space<vmem>>, vector<8x128xbf16>
      tpu.vector_store %arg13[%c0_39, %c0_40], %49 {strides = array<i32>} : memref<8x128xbf16, #tpu.memory_space<vmem>>, vector<8x128xbf16>,
      %51 = arith.truncf %48 : vector<8x128xf32> to vector<8x128xbf16>
      %c0_41 = arith.constant 0 : index
      %c0_42 = arith.constant 0 : index
      %52 = vector.load %arg14[%c0_41, %c0_42] : memref<8x128xbf16, #tpu.memory_space<vmem>>, vector<8x128xbf16>
      tpu.vector_store %arg14[%c0_41, %c0_42], %51 {strides = array<i32>} : memref<8x128xbf16, #tpu.memory_space<vmem>>, vector<8x128xbf16>,
    } else {
    }
    %c0 = arith.constant 0 : index
    %c0_1 = arith.constant 0 : index
    %c0_2 = arith.constant 0 : index
    %3 = vector.load %arg2[%c0, %c0_1, %c0_2] : memref<1x8x128xbf16, #tpu.memory_space<vmem>>, vector<1x8x128xbf16>
    %4 = vector.shape_cast %3 : vector<1x8x128xbf16> to vector<8x128xbf16>
    %c0_3 = arith.constant 0 : index
    %c0_4 = arith.constant 0 : index
    %5 = vector.load %arg4[%c0_3, %c0_4] : memref<128x128xbf16, #tpu.memory_space<vmem>>, vector<128x128xbf16>
    %cst = arith.constant dense<0.000000e+00> : vector<8x128xf32>
    %6 = tpu.matmul %4, %5, %cst {dimension_numbers = #tpu.dot_dimension_numbers<[1], [0], [0], [1], [0, 0, 1, 1], [], []>} : vector<8x128xbf16>, vector<128x128xbf16>, vector<8x128xf32> -> vector<8x128xf32>
    %c0_5 = arith.constant 0 : index
    %c0_6 = arith.constant 0 : index
    %7 = vector.load %arg5[%c0_5, %c0_6] : memref<1x128xf32, #tpu.memory_space<vmem>>, vector<1x128xf32>
    %8 = vector.broadcast %7 : vector<1x128xf32> to vector<8x128xf32>
    %9 = arith.addf %6, %8 : vector<8x128xf32>
    %10 = arith.truncf %9 : vector<8x128xf32> to vector<8x128xbf16>
    %c0_7 = arith.constant 0 : index
    %c0_8 = arith.constant 0 : index
    %11 = vector.load %arg13[%c0_7, %c0_8] : memref<8x128xbf16, #tpu.memory_space<vmem>>, vector<8x128xbf16>
    %cst_9 = arith.constant dense<0.000000e+00> : vector<8x8xf32>
    %12 = tpu.matmul %10, %11, %cst_9 {dimension_numbers = #tpu.dot_dimension_numbers<[1], [1], [0], [0], [0, 0, 1, 0], [], []>} : vector<8x128xbf16>, vector<8x128xbf16>, vector<8x8xf32> -> vector<8x8xf32>
    %cst_10 = arith.constant dense<0xFF800000> : vector<8xf32>
    %13 = vector.multi_reduction <maximumf>, %12, %cst_10 [1] : vector<8x8xf32> to vector<8xf32>
    %14 = vector.shape_cast %13 : vector<8xf32> to vector<8x1xf32>
    %15 = vector.broadcast %14 : vector<8x1xf32> to vector<8x8xf32>
    %16 = arith.subf %12, %15 : vector<8x8xf32>
    %17 = math.exp %16 : vector<8x8xf32>
    %cst_11 = arith.constant dense<0.000000e+00> : vector<8xf32>
    %18 = vector.multi_reduction <add>, %17, %cst_11 [1] : vector<8x8xf32> to vector<8xf32>
    %19 = vector.shape_cast %18 : vector<8xf32> to vector<8x1xf32>
    %20 = tpu.reciprocal %19 : vector<8x1xf32> -> vector<8x1xf32>
    %21 = vector.broadcast %20 : vector<8x1xf32> to vector<8x8xf32>
    %22 = arith.mulf %17, %21 : vector<8x8xf32>
    %23 = arith.truncf %22 : vector<8x8xf32> to vector<8x8xbf16>
    %c0_12 = arith.constant 0 : index
    %c0_13 = arith.constant 0 : index
    %24 = vector.load %arg14[%c0_12, %c0_13] : memref<8x128xbf16, #tpu.memory_space<vmem>>, vector<8x128xbf16>
    %cst_14 = arith.constant dense<0.000000e+00> : vector<8x128xf32>
    %25 = tpu.matmul %23, %24, %cst_14 {dimension_numbers = #tpu.dot_dimension_numbers<[1], [0], [0], [1], [0, 0, 1, 1], [], []>} : vector<8x8xbf16>, vector<8x128xbf16>, vector<8x128xf32> -> vector<8x128xf32>
    %c0_15 = arith.constant 0 : index
    %c0_16 = arith.constant 0 : index
    %26 = vector.load %arg10[%c0_15, %c0_16] : memref<1x128xf32, #tpu.memory_space<vmem>>, vector<1x128xf32>
    %27 = vector.broadcast %26 : vector<1x128xf32> to vector<8x128xf32>
    %28 = arith.addf %25, %27 : vector<8x128xf32>
    %c0_17 = arith.constant 0 : index
    %c0_18 = arith.constant 0 : index
    %c0_19 = arith.constant 0 : index
    %29 = vector.load %arg11[%c0_17, %c0_18, %c0_19] : memref<1x8x128xf32, #tpu.memory_space<vmem>>, vector<1x8x128xf32>
    %30 = vector.shape_cast %29 : vector<1x8x128xf32> to vector<8x128xf32>
    %31 = vector.shape_cast %28 : vector<8x128xf32> to vector<1x8x128xf32>
    tpu.vector_store %arg11[%c0_17, %c0_18, %c0_19], %31 {strides = array<i32>} : memref<1x8x128xf32, #tpu.memory_space<vmem>>, vector<1x8x128xf32>,
    %c0_20 = arith.constant 0 : index
    %c0_21 = arith.constant 0 : index
    %c0_22 = arith.constant 0 : index
    %32 = vector.load %arg12[%c0_20, %c0_21, %c0_22] : memref<1x8x8xf32, #tpu.memory_space<vmem>>, vector<1x8x8xf32>
    %33 = vector.shape_cast %32 : vector<1x8x8xf32> to vector<8x8xf32>
    %34 = vector.shape_cast %22 : vector<8x8xf32> to vector<1x8x8xf32>
    tpu.vector_store %arg12[%c0_20, %c0_21, %c0_22], %34 {strides = array<i32>} : memref<1x8x8xf32, #tpu.memory_space<vmem>>, vector<1x8x8xf32>,
    return
  }
  func.func @transform_0(%arg0: i32, %arg1: i32) -> (i32, i32, i32) {
    %c0_i32 = arith.constant 0 : i32
    %c0_i32_0 = arith.constant 0 : i32
    return %arg0, %arg1, %c0_i32 : i32, i32, i32
  }
  func.func @transform_1(%arg0: i32, %arg1: i32) -> (i32, i32, i32) {
    %c0_i32 = arith.constant 0 : i32
    %c0_i32_0 = arith.constant 0 : i32
    %c0_i32_1 = arith.constant 0 : i32
    return %arg0, %c0_i32, %c0_i32_0 : i32, i32, i32
  }
  func.func @transform_2(%arg0: i32, %arg1: i32) -> (i32, i32) {
    %c0_i32 = arith.constant 0 : i32
    %c0_i32_0 = arith.constant 0 : i32
    %c0_i32_1 = arith.constant 0 : i32
    return %c0_i32, %c0_i32_0 : i32, i32
  }
  func.func @transform_3(%arg0: i32, %arg1: i32) -> (i32, i32) {
    %c0_i32 = arith.constant 0 : i32
    %c0_i32_0 = arith.constant 0 : i32
    %c0_i32_1 = arith.constant 0 : i32
    return %c0_i32, %c0_i32_0 : i32, i32
  }
  func.func @transform_4(%arg0: i32, %arg1: i32) -> (i32, i32) {
    %c0_i32 = arith.constant 0 : i32
    %c0_i32_0 = arith.constant 0 : i32
    %c0_i32_1 = arith.constant 0 : i32
    return %c0_i32, %c0_i32_0 : i32, i32
  }
  func.func @transform_5(%arg0: i32, %arg1: i32) -> (i32, i32) {
    %c0_i32 = arith.constant 0 : i32
    %c0_i32_0 = arith.constant 0 : i32
    %c0_i32_1 = arith.constant 0 : i32
    return %c0_i32, %c0_i32_0 : i32, i32
  }
  func.func @transform_6(%arg0: i32, %arg1: i32) -> (i32, i32) {
    %c0_i32 = arith.constant 0 : i32
    %c0_i32_0 = arith.constant 0 : i32
    %c0_i32_1 = arith.constant 0 : i32
    return %c0_i32, %c0_i32_0 : i32, i32
  }
  func.func @transform_7(%arg0: i32, %arg1: i32) -> (i32, i32) {
    %c0_i32 = arith.constant 0 : i32
    %c0_i32_0 = arith.constant 0 : i32
    %c0_i32_1 = arith.constant 0 : i32
    return %c0_i32, %c0_i32_0 : i32, i32
  }
  func.func @transform_8(%arg0: i32, %arg1: i32) -> (i32, i32) {
    %c0_i32 = arith.constant 0 : i32
    %c0_i32_0 = arith.constant 0 : i32
    %c0_i32_1 = arith.constant 0 : i32
    return %c0_i32, %c0_i32_0 : i32, i32
  }
  func.func @transform_9(%arg0: i32, %arg1: i32) -> (i32, i32, i32) {
    %c0_i32 = arith.constant 0 : i32
    %c0_i32_0 = arith.constant 0 : i32
    return %arg0, %arg1, %c0_i32 : i32, i32, i32
  }
  func.func @transform_10(%arg0: i32, %arg1: i32) -> (i32, i32, i32) {
    %c0_i32 = arith.constant 0 : i32
    %c0_i32_0 = arith.constant 0 : i32
    return %arg0, %arg1, %c0_i32 : i32, i32, i32
  }
}

module attributes {stable_mosaic.version = 11 : i64} {
  func.func @kernel(%arg0: i32, %arg1: i32, %arg2: memref<1x8x128xbf16, #tpu.memory_space<vmem>>, %arg3: memref<1x8x128xbf16, #tpu.memory_space<vmem>>, %arg4: memref<128x128xbf16, #tpu.memory_space<vmem>>, %arg5: memref<1x128xf32, #tpu.memory_space<vmem>>, %arg6: memref<128x128xbf16, #tpu.memory_space<vmem>>, %arg7: memref<1x128xf32, #tpu.memory_space<vmem>>, %arg8: memref<128x128xbf16, #tpu.memory_space<vmem>>, %arg9: memref<1x128xf32, #tpu.memory_space<vmem>>, %arg10: memref<1x128xf32, #tpu.memory_space<vmem>>, %arg11: memref<1x8x128xf32, #tpu.memory_space<vmem>>, %arg12: memref<1x8x8xf32, #tpu.memory_space<vmem>>, %arg13: memref<8x128xbf16, #tpu.memory_space<vmem>>, %arg14: memref<8x128xbf16, #tpu.memory_space<vmem>>) attributes {dimension_semantics = [#tpu.dimension_semantics<parallel>, #tpu.dimension_semantics<arbitrary>], iteration_bounds = array<i64: 2, 1>, scalar_prefetch = 0 : i64, scratch_operands = 2 : i64, tpu.core_type = #tpu.core_type<tc>, window_params = [{transform_indices = @transform_0, window_bounds = array<i64: 1, 8, 128>}, {transform_indices = @transform_1, window_bounds = array<i64: 1, 8, 128>}, {pipeline_mode = #tpu.pipeline_mode<synchronous>, transform_indices = @transform_2, window_bounds = array<i64: 128, 128>}, {pipeline_mode = #tpu.pipeline_mode<synchronous>, transform_indices = @transform_3, window_bounds = array<i64: 1, 128>}, {pipeline_mode = #tpu.pipeline_mode<synchronous>, transform_indices = @transform_4, window_bounds = array<i64: 128, 128>}, {pipeline_mode = #tpu.pipeline_mode<synchronous>, transform_indices = @transform_5, window_bounds = array<i64: 1, 128>}, {pipeline_mode = #tpu.pipeline_mode<synchronous>, transform_indices = @transform_6, window_bounds = array<i64: 128, 128>}, {pipeline_mode = #tpu.pipeline_mode<synchronous>, transform_indices = @transform_7, window_bounds = array<i64: 1, 128>}, {pipeline_mode = #tpu.pipeline_mode<synchronous>, transform_indices = @transform_8, window_bounds = array<i64: 1, 128>}, {transform_indices = @transform_9, window_bounds = array<i64: 1, 8, 128>}, {transform_indices = @transform_10, window_bounds = array<i64: 1, 8, 8>}]} {
    %c0_i32 = arith.constant 0 : i32
    %0 = arith.cmpi eq, %arg1, %c0_i32 : i32
    %1 = arith.extui %0 : i1 to i32
    %c0_i32_0 = arith.constant 0 : i32
    %2 = arith.cmpi ne, %1, %c0_i32_0 : i32
    scf.if %2 {
      %c0_23 = arith.constant 0 : index
      %c0_24 = arith.constant 0 : index
      %c0_25 = arith.constant 0 : index
      %35 = vector.load %arg3[%c0_23, %c0_24, %c0_25] : memref<1x8x128xbf16, #tpu.memory_space<vmem>>, vector<1x8x128xbf16>
      %36 = vector.shape_cast %35 : vector<1x8x128xbf16> to vector<8x128xbf16>
      %c0_26 = arith.constant 0 : index
      %c0_27 = arith.constant 0 : index
      %37 = vector.load %arg6[%c0_26, %c0_27] : memref<128x128xbf16, #tpu.memory_space<vmem>>, vector<128x128xbf16>
      %cst_28 = arith.constant dense<0.000000e+00> : vector<8x128xf32>
      %38 = tpu.matmul %36, %37, %cst_28 {dimension_numbers = #tpu.dot_dimension_numbers<[1], [0], [0], [1], [0, 0, 1, 1], [], []>} : vector<8x128xbf16>, vector<128x128xbf16>, vector<8x128xf32> -> vector<8x128xf32>
      %c0_29 = arith.constant 0 : index
      %c0_30 = arith.constant 0 : index
      %39 = vector.load %arg7[%c0_29, %c0_30] : memref<1x128xf32, #tpu.memory_space<vmem>>, vector<1x128xf32>
      %40 = vector.broadcast %39 : vector<1x128xf32> to vector<8x128xf32>
      %41 = arith.addf %38, %40 : vector<8x128xf32>
      %c0_31 = arith.constant 0 : index
      %c0_32 = arith.constant 0 : index
      %c0_33 = arith.constant 0 : index
      %42 = vector.load %arg3[%c0_31, %c0_32, %c0_33] : memref<1x8x128xbf16, #tpu.memory_space<vmem>>, vector<1x8x128xbf16>
      %43 = vector.shape_cast %42 : vector<1x8x128xbf16> to vector<8x128xbf16>
      %c0_34 = arith.constant 0 : index
      %c0_35 = arith.constant 0 : index
      %44 = vector.load %arg8[%c0_34, %c0_35] : memref<128x128xbf16, #tpu.memory_space<vmem>>, vector<128x128xbf16>
      %cst_36 = arith.constant dense<0.000000e+00> : vector<8x128xf32>
      %45 = tpu.matmul %43, %44, %cst_36 {dimension_numbers = #tpu.dot_dimension_numbers<[1], [0], [0], [1], [0, 0, 1, 1], [], []>} : vector<8x128xbf16>, vector<128x128xbf16>, vector<8x128xf32> -> vector<8x128xf32>
      %c0_37 = arith.constant 0 : index
      %c0_38 = arith.constant 0 : index
      %46 = vector.load %arg9[%c0_37, %c0_38] : memref<1x128xf32, #tpu.memory_space<vmem>>, vector<1x128xf32>
      %47 = vector.broadcast %46 : vector<1x128xf32> to vector<8x128xf32>
      %48 = arith.addf %45, %47 : vector<8x128xf32>
      %49 = arith.truncf %41 : vector<8x128xf32> to vector<8x128xbf16>
      %c0_39 = arith.constant 0 : index
      %c0_40 = arith.constant 0 : index
      %50 = vector.load %arg13[%c0_39, %c0_40] : memref<8x128xbf16, #tpu.memory_space<vmem>>, vector<8x128xbf16>
      tpu.vector_store %arg13[%c0_39, %c0_40], %49 {strides = array<i32>} : memref<8x128xbf16, #tpu.memory_space<vmem>>, vector<8x128xbf16>,
      %51 = arith.truncf %48 : vector<8x128xf32> to vector<8x128xbf16>
      %c0_41 = arith.constant 0 : index
      %c0_42 = arith.constant 0 : index
      %52 = vector.load %arg14[%c0_41, %c0_42] : memref<8x128xbf16, #tpu.memory_space<vmem>>, vector<8x128xbf16>
      tpu.vector_store %arg14[%c0_41, %c0_42], %51 {strides = array<i32>} : memref<8x128xbf16, #tpu.memory_space<vmem>>, vector<8x128xbf16>,
    } else {
    }
    %c0 = arith.constant 0 : index
    %c0_1 = arith.constant 0 : index
    %c0_2 = arith.constant 0 : index
    %3 = vector.load %arg2[%c0, %c0_1, %c0_2] : memref<1x8x128xbf16, #tpu.memory_space<vmem>>, vector<1x8x128xbf16>
    %4 = vector.shape_cast %3 : vector<1x8x128xbf16> to vector<8x128xbf16>
    %c0_3 = arith.constant 0 : index
    %c0_4 = arith.constant 0 : index
    %5 = vector.load %arg4[%c0_3, %c0_4] : memref<128x128xbf16, #tpu.memory_space<vmem>>, vector<128x128xbf16>
    %cst = arith.constant dense<0.000000e+00> : vector<8x128xf32>
    %6 = tpu.matmul %4, %5, %cst {dimension_numbers = #tpu.dot_dimension_numbers<[1], [0], [0], [1], [0, 0, 1, 1], [], []>} : vector<8x128xbf16>, vector<128x128xbf16>, vector<8x128xf32> -> vector<8x128xf32>
    %c0_5 = arith.constant 0 : index
    %c0_6 = arith.constant 0 : index
    %7 = vector.load %arg5[%c0_5, %c0_6] : memref<1x128xf32, #tpu.memory_space<vmem>>, vector<1x128xf32>
    %8 = vector.broadcast %7 : vector<1x128xf32> to vector<8x128xf32>
    %9 = arith.addf %6, %8 : vector<8x128xf32>
    %10 = arith.truncf %9 : vector<8x128xf32> to vector<8x128xbf16>
    %c0_7 = arith.constant 0 : index
    %c0_8 = arith.constant 0 : index
    %11 = vector.load %arg13[%c0_7, %c0_8] : memref<8x128xbf16, #tpu.memory_space<vmem>>, vector<8x128xbf16>
    %cst_9 = arith.constant dense<0.000000e+00> : vector<8x8xf32>
    %12 = tpu.matmul %10, %11, %cst_9 {dimension_numbers = #tpu.dot_dimension_numbers<[1], [1], [0], [0], [0, 0, 1, 0], [], []>} : vector<8x128xbf16>, vector<8x128xbf16>, vector<8x8xf32> -> vector<8x8xf32>
    %cst_10 = arith.constant dense<0xFF800000> : vector<8xf32>
    %13 = vector.multi_reduction <maximumf>, %12, %cst_10 [1] : vector<8x8xf32> to vector<8xf32>
    %14 = vector.shape_cast %13 : vector<8xf32> to vector<8x1xf32>
    %15 = vector.broadcast %14 : vector<8x1xf32> to vector<8x8xf32>
    %16 = arith.subf %12, %15 : vector<8x8xf32>
    %17 = math.exp %16 : vector<8x8xf32>
    %cst_11 = arith.constant dense<0.000000e+00> : vector<8xf32>
    %18 = vector.multi_reduction <add>, %17, %cst_11 [1] : vector<8x8xf32> to vector<8xf32>
    %19 = vector.shape_cast %18 : vector<8xf32> to vector<8x1xf32>
    %20 = tpu.reciprocal %19 : vector<8x1xf32> -> vector<8x1xf32>
    %21 = vector.broadcast %20 : vector<8x1xf32> to vector<8x8xf32>
    %22 = arith.mulf %17, %21 : vector<8x8xf32>
    %23 = arith.truncf %22 : vector<8x8xf32> to vector<8x8xbf16>
    %c0_12 = arith.constant 0 : index
    %c0_13 = arith.constant 0 : index
    %24 = vector.load %arg14[%c0_12, %c0_13] : memref<8x128xbf16, #tpu.memory_space<vmem>>, vector<8x128xbf16>
    %cst_14 = arith.constant dense<0.000000e+00> : vector<8x128xf32>
    %25 = tpu.matmul %23, %24, %cst_14 {dimension_numbers = #tpu.dot_dimension_numbers<[1], [0], [0], [1], [0, 0, 1, 1], [], []>} : vector<8x8xbf16>, vector<8x128xbf16>, vector<8x128xf32> -> vector<8x128xf32>
    %c0_15 = arith.constant 0 : index
    %c0_16 = arith.constant 0 : index
    %26 = vector.load %arg10[%c0_15, %c0_16] : memref<1x128xf32, #tpu.memory_space<vmem>>, vector<1x128xf32>
    %27 = vector.broadcast %26 : vector<1x128xf32> to vector<8x128xf32>
    %28 = arith.addf %25, %27 : vector<8x128xf32>
    %c0_17 = arith.constant 0 : index
    %c0_18 = arith.constant 0 : index
    %c0_19 = arith.constant 0 : index
    %29 = vector.load %arg11[%c0_17, %c0_18, %c0_19] : memref<1x8x128xf32, #tpu.memory_space<vmem>>, vector<1x8x128xf32>
    %30 = vector.shape_cast %29 : vector<1x8x128xf32> to vector<8x128xf32>
    %31 = vector.shape_cast %28 : vector<8x128xf32> to vector<1x8x128xf32>
    tpu.vector_store %arg11[%c0_17, %c0_18, %c0_19], %31 {strides = array<i32>} : memref<1x8x128xf32, #tpu.memory_space<vmem>>, vector<1x8x128xf32>,
    %c0_20 = arith.constant 0 : index
    %c0_21 = arith.constant 0 : index
    %c0_22 = arith.constant 0 : index
    %32 = vector.load %arg12[%c0_20, %c0_21, %c0_22] : memref<1x8x8xf32, #tpu.memory_space<vmem>>, vector<1x8x8xf32>
    %33 = vector.shape_cast %32 : vector<1x8x8xf32> to vector<8x8xf32>
    %34 = vector.shape_cast %22 : vector<8x8xf32> to vector<1x8x8xf32>
    tpu.vector_store %arg12[%c0_20, %c0_21, %c0_22], %34 {strides = array<i32>} : memref<1x8x8xf32, #tpu.memory_space<vmem>>, vector<1x8x8xf32>,
    return
  }
  func.func @transform_0(%arg0: i32, %arg1: i32) -> (i32, i32, i32) {
    %c0_i32 = arith.constant 0 : i32
    %c0_i32_0 = arith.constant 0 : i32
    return %arg0, %arg1, %c0_i32 : i32, i32, i32
  }
  func.func @transform_1(%arg0: i32, %arg1: i32) -> (i32, i32, i32) {
    %c0_i32 = arith.constant 0 : i32
    %c0_i32_0 = arith.constant 0 : i32
    %c0_i32_1 = arith.constant 0 : i32
    return %arg0, %c0_i32, %c0_i32_0 : i32, i32, i32
  }
  func.func @transform_2(%arg0: i32, %arg1: i32) -> (i32, i32) {
    %c0_i32 = arith.constant 0 : i32
    %c0_i32_0 = arith.constant 0 : i32
    %c0_i32_1 = arith.constant 0 : i32
    return %c0_i32, %c0_i32_0 : i32, i32
  }
  func.func @transform_3(%arg0: i32, %arg1: i32) -> (i32, i32) {
    %c0_i32 = arith.constant 0 : i32
    %c0_i32_0 = arith.constant 0 : i32
    %c0_i32_1 = arith.constant 0 : i32
    return %c0_i32, %c0_i32_0 : i32, i32
  }
  func.func @transform_4(%arg0: i32, %arg1: i32) -> (i32, i32) {
    %c0_i32 = arith.constant 0 : i32
    %c0_i32_0 = arith.constant 0 : i32
    %c0_i32_1 = arith.constant 0 : i32
    return %c0_i32, %c0_i32_0 : i32, i32
  }
  func.func @transform_5(%arg0: i32, %arg1: i32) -> (i32, i32) {
    %c0_i32 = arith.constant 0 : i32
    %c0_i32_0 = arith.constant 0 : i32
    %c0_i32_1 = arith.constant 0 : i32
    return %c0_i32, %c0_i32_0 : i32, i32
  }
  func.func @transform_6(%arg0: i32, %arg1: i32) -> (i32, i32) {
    %c0_i32 = arith.constant 0 : i32
    %c0_i32_0 = arith.constant 0 : i32
    %c0_i32_1 = arith.constant 0 : i32
    return %c0_i32, %c0_i32_0 : i32, i32
  }
  func.func @transform_7(%arg0: i32, %arg1: i32) -> (i32, i32) {
    %c0_i32 = arith.constant 0 : i32
    %c0_i32_0 = arith.constant 0 : i32
    %c0_i32_1 = arith.constant 0 : i32
    return %c0_i32, %c0_i32_0 : i32, i32
  }
  func.func @transform_8(%arg0: i32, %arg1: i32) -> (i32, i32) {
    %c0_i32 = arith.constant 0 : i32
    %c0_i32_0 = arith.constant 0 : i32
    %c0_i32_1 = arith.constant 0 : i32
    return %c0_i32, %c0_i32_0 : i32, i32
  }
  func.func @transform_9(%arg0: i32, %arg1: i32) -> (i32, i32, i32) {
    %c0_i32 = arith.constant 0 : i32
    %c0_i32_0 = arith.constant 0 : i32
    return %arg0, %arg1, %c0_i32 : i32, i32, i32
  }
  func.func @transform_10(%arg0: i32, %arg1: i32) -> (i32, i32, i32) {
    %c0_i32 = arith.constant 0 : i32
    %c0_i32_0 = arith.constant 0 : i32
    return %arg0, %arg1, %c0_i32 : i32, i32, i32
  }
}

</mosaic_0001>

<bundles_post_ra>
// kernel: tpu_custom_call.1
= control target key start
LH: loop header
LB: loop body
LE: loop exit
PB: predicated region body
PF: predicated region fallthrough
CT: control target
= control target key end

     0   :  { %s2052_s0 = inlined_call_operand.hbm [shape: bf16[2,8,128], index: 0, kind: input, shape index: {}]   ;;  %s2053_s1 = inlined_call_operand.hbm [shape: bf16[2,8,128], index: 1, kind: input, shape index: {}]   ;;  %s2054_s2 = inlined_call_operand.hbm [shape: bf16[128,128], index: 2, kind: input, shape index: {}]   ;;  %s2055_s3 = inlined_call_operand.vmem [shape: f32[1,128], index: 3, kind: input, shape index: {}]   ;;  %s2056_s4 = inlined_call_operand.hbm [shape: bf16[128,128], index: 4, kind: input, shape index: {}]   ;;  %s2057_s5 = inlined_call_operand.vmem [shape: f32[1,128], index: 5, kind: input, shape index: {}]   ;;  %s2058_s6 = inlined_call_operand.hbm [shape: bf16[128,128], index: 6, kind: input, shape index: {}]   ;;  %s2059_s7 = inlined_call_operand.vmem [shape: f32[1,128], index: 7, kind: input, shape index: {}]   ;;  %s2060_s8 = inlined_call_operand.vmem [shape: f32[1,128], index: 8, kind: input, shape index: {}]   ;;  %s2061_s9 = inlined_call_operand.hbm [shape: f32[2,8,128], index: 9, kind: output, shape index: {0}]   ;;  %s2062_s10 = inlined_call_operand.hbm [shape: f32[2,8,8], index: 10, kind: output, shape index: {1}]  }
   0x1   :  { %2069 = sst [smem:[#allocation25_spill]] %s2052_s0 }
   0x2   :  { %2070 = sst [smem:[#allocation26_spill]] %s2054_s2 }
   0x3   :  { %2071 = sst [smem:[#allocation27_spill]] %s2056_s4 }
   0x4   :  { %2072 = sst [smem:[#allocation28_spill]] %s2058_s6 }
   0x5   :  { %2073 = sst [smem:[#allocation29_spill]] %s2061_s9 }
   0x6   :  { %16 = vsyncpa [#allocation5], 0 }
   0x7   :  { %18 = vsyncpa [#allocation5 + $0x1], 0 }
   0x8   :  { %19 = vsyncpa [#allocation8], 0 }
   0x9   :  { %21 = vsyncpa [#allocation8 + $0x1], 0 }
   0xa   :  { %22 = vsyncpa [#allocation11], 0 }
   0xb   :  { %23 = vsyncpa [#allocation6], 0 }
   0xc   :  { %25 = vsyncpa [#allocation6 + $0x1], 0 }
   0xd   :  { %26 = vsyncpa [#allocation15], 0 }
   0xe   :  { %28 = vsyncpa [#allocation15 + $0x1], 0  ;;  %s1755_s13 = smov 0   ;;  %s1757_s14 = smov 0  }
   0xf   :  { %s1759_s15 = smov 0   ;;  %s1761_s16 = smov 0  }
  0x10   :  { %s1763_s17 = smov 0   ;;  %s1765_s18 = smov 0  }
  0x11 LB: > { %2074 = sst [smem:[#allocation22_spill]] %s1667_s13  ;;  %s1786_s19 = sadd.s32 4294967295, %s1687_s18   ;;  %s1687_s18 = sphi %s1765_s18, %s34_s18   ;;  %s1683_s17 = sphi %s1763_s17, %s2103_s17   ;;  %s1679_s16 = sphi %s1761_s16, %s2102_s16   ;;  %s1675_s15 = sphi %s1759_s15, %s2101_s15   ;;  %s1671_s14 = sphi %s1757_s14, %s2100_s14   ;;  %s1667_s13 = sphi %s1755_s13, %s2099_s13  }
  0x12   : > { %s1140_s20 = sadd.s32 4294967294, %s1687_s18   ;;  %p68_p0 = scmp.ne.s32.totalorder %s1671_s14, %s1667_s13 }
  0x13   : > { %p2063_p1 = scmp.eq.s32.totalorder %s1786_s19, 0  ;;  %p273_p3 = scmp.eq.s32.totalorder %s1140_s20, 1 }
  0x14   : > { %p1141_p5 = scmp.ge.s32.totalorder %s1687_s18, 1  ;;  %p308_p7 = scmp.lt.s32.totalorder %s1687_s18, 3 }
  0x15   : > { %p1795_p4 = por %p2063_p1, %p68_p0  ;;  %p1800_p6 = por %p273_p3, %p68_p0 }
  0x16   : > { %p1805_p8 = pnand %p1141_p5, %p308_p7  ;;  %s1689_s24 = smov [#allocation9]  }
  0x17   : > { %s2075_s21 = scalar_select %p1795_p4, 1, 0 }
  0x18   : > { %s2076_s22 = scalar_select %p1800_p6, 1, 0 }
  0x19   : > { %s320_s25 = sshll.u32 %s1689_s24, 4  ;;  %p1316_p9 = pneg %p1805_p8  ;;  %s321_s25 = int_to_ptr.vmem [resolvable:$true] %s320_s25 }
  0x1a   : > { %2077 = sst [smem:[#allocation23_spill]] %s2076_s22  ;;  %s1690_s27 = smov [#allocation10]  }
  0x1b   : > { %p1814_p11 = pnand %p1316_p9, %p2063_p1  ;;  %s336_s28 = sshll.u32 %s1690_s27, 4  ;;  %s337_s28 = int_to_ptr.vmem [resolvable:$true] %s336_s28 }
  0x1c   : > { %s1691_s29 = smov [#allocation12]   ;;  %s1442_s11 = scalar_lea.vmem %s321_s25, 1024 }
  0x1d   : > { %s352_s30 = sshll.u32 %s1691_s29, 4  ;;  %p1433_p12 = pneg %p1814_p11  ;;  %s353_s30 = int_to_ptr.vmem [resolvable:$true] %s352_s30 }
  0x1e   : > { %p1443_p13 = scmp.ne.s32.totalorder %s321_s25, %s1442_s11  ;;  %p1450_p5 = scmp.lt.s32.totalorder %s321_s25, %s321_s25 }
  0x1f   : > { %p1451_p7 = scmp.lt.s32.totalorder %s1442_s11, %s1442_s11 }
  0x20   : > { %p1445_p0 = pnand %p1443_p13, %p1433_p12 }
  0x21   : > { %p1452_p9 = por %p1451_p7, %p1450_p5 }
  0x22   : > { %p1446_p3 = pneg %p1445_p0 }
  0x24   : > { %p1453_p10 = pnand %p1452_p9, %p1446_p3 }
  0x26   : > { %1456 = shalt.err (!%p1453_p10)
}
  0x27   : > { %s1692_s12 = smov 64   ;;  %s1693_s20 = smov 4  }
  0x28   : > { %s2080_s2 = sld [smem:[#allocation26_spill]]  ;;  %s1468_s29 = scalar_lea.vmem %s337_s28, 1024 }
  0x29   : > { %p1469_p1 = scmp.ne.s32.totalorder %s337_s28, %s1468_s29  ;;  %p1476_p2 = scmp.lt.s32.totalorder %s337_s28, %s337_s28 }
  0x2a   : > { %p1477_p6 = scmp.lt.s32.totalorder %s1468_s29, %s1468_s29 }
  0x2b   : > { %p1471_p13 = pnand %p1469_p1, %p1433_p12 }
  0x2c   : > { %p1478_p5 = por %p1477_p6, %p1476_p2 }
  0x2d   : > { %p1472_p0 = pneg %p1471_p13 }
  0x2e   : > { %1319 = dma.hbm_to_vmem [thread:$0]  (!%p1814_p11), %s2080_s2, 1024, %s321_s25, [#allocation8], %s1692_s12, %s1692_s12, %s1693_s20  }
  0x2f   : > { %p1479_p3 = pnand %p1478_p5, %p1472_p0 }
  0x31   : > { %1482 = shalt.err (!%p1479_p3)
}
  0x32   : > { %s2081_s4 = sld [smem:[#allocation27_spill]]  ;;  %s1494_s25 = scalar_lea.vmem %s353_s30, 1024 }
  0x33   : > { %p1495_p10 = scmp.ne.s32.totalorder %s353_s30, %s1494_s25  ;;  %p1502_p9 = scmp.lt.s32.totalorder %s353_s30, %s353_s30 }
  0x34   : > { %p1503_p13 = scmp.lt.s32.totalorder %s1494_s25, %s1494_s25 }
  0x35   : > { %p1497_p7 = pnand %p1495_p10, %p1433_p12 }
  0x36   : > { %p1504_p4 = por %p1503_p13, %p1502_p9 }
  0x37   : > { %p1498_p1 = pneg %p1497_p7 }
  0x38   : > { %1322 = dma.hbm_to_vmem [thread:$0]  (!%p1814_p11), %s2081_s4, 1024, %s337_s28, [#allocation11], %s1692_s12, %s1692_s12, %s1693_s20  }
  0x39   : > { %p1505_p2 = pnand %p1504_p4, %p1498_p1 }
  0x3b   : > { %1508 = shalt.err (!%p1505_p2)
}
  0x3c   : > { %s2082_s6 = sld [smem:[#allocation28_spill]]  ;;  %s55_s22 = sadd.s32 1, %s1675_s15 }
  0x3d   : > { %s46_s28 = sadd.s32 1, %s1683_s17  ;;  %p62_p4 = scmp.ne.s32.totalorder %s1675_s15, %s1671_s14 }
  0x3e   : > { %p48_p6 = scmp.ge.s32.totalorder %s46_s28, 2  ;;  %p63_p12 = scmp.eq.s32.totalorder %s1687_s18, 0 }
  0x3f   : > { %p2083_p0 = scmp.eq.s32.totalorder %s1786_s19, 1  ;;  %p1343_p3 = scmp.lt.s32.totalorder %s1687_s18, 2 }
  0x40   : > { %s2105_s28 = smov (%p48_p6, %s46_s28), 0  ;;  %p64_p10 = por %p63_p12, %p62_p4 }
  0x41   : > { %p1851_p5 = por %p2083_p0, %p62_p4  ;;  %2085 = sst [smem:[#allocation24_spill]] %s2105_s28 }
  0x42   : > { %1325 = dma.hbm_to_vmem [thread:$0]  (!%p1814_p11), %s2082_s6, 1024, %s353_s30, [#allocation11], %s1692_s12, %s1692_s12, %s1693_s20  }
  0x43   : > { %s372_s29 = sand.u32 1, %s1675_s15   ;;  %s50_s11 = ssub.s32 %s1683_s17, %s2105_s28 }
  0x44   : > { %p53_p11 = scmp.eq.s32.totalorder %s50_s11, 0  ;;  %s1146_s30 = sshll.u32 %s372_s29, 2 }
  0x45   : > { %s1147_s12 = sshll.u32 %s1683_s17, 6  ;;  %s2086_s0 = sld [smem:[#allocation25_spill]] }
  0x46   : > { %s1863_s20 = scalar_select %p53_p11, %s1675_s15, %s55_s22  }
  0x47   : > { %s376_s2 = scalar_lea.vmem [#allocation4], %s1146_s30  ;;  %p1870_p7 = pnand %p1343_p3, %p64_p10 }
  0x48   : > { %s384_s4 = sshll.u32 %s376_s2, 4  ;;  %s1877_s11 = scalar_lea.hbm %s2053_s1, %s1147_s12  ;;  %s385_s4 = int_to_ptr.vmem [resolvable:$true] %s384_s4 }
  0x49   : > { %s391_s22 = sand.u32 1, %s1687_s18   ;;  %s373_s28 = scalar_lea.sflag [#allocation5], %s372_s29 }
  0x4a   : > { %p1511_p1 = pneg %p1870_p7  ;;  %s1522_s25 = scalar_lea.vmem %s385_s4, 64 }
  0x4b   : > { %s382_s27 = scalar_lea.hbm %s2086_s0, %s1147_s12  ;;  %p1523_p9 = scmp.ne.s32.totalorder %s385_s4, %s1522_s25 }
  0x4c   : > { %s1694_s2 = smov [#allocation4]  }
  0x4d   : > { %p1525_p13 = pnand %p1523_p9, %p1511_p1  ;;  %s1527_s24 = sshll.u32 %s1694_s2, 4  ;;  %s1528_s24 = int_to_ptr.vmem [resolvable:$false] %s1527_s24 }
  0x4e   : > { %s1529_s0 = scalar_lea.vmem %s1528_s24, 128  ;;  %p1530_p4 = scmp.lt.s32.totalorder %s385_s4, %s1528_s24 }
  0x4f   : > { %p1526_p2 = pneg %p1525_p13  ;;  %p1531_p6 = scmp.lt.s32.totalorder %s1529_s0, %s1522_s25 }
  0x51   : > { %p1532_p12 = por %p1531_p6, %p1530_p4 }
  0x53   : > { %p1533_p0 = pnand %p1532_p12, %p1526_p2 }
  0x55   : > { %1536 = shalt.err (!%p1533_p0)
}
  0x56   : > { %1329 = dma.hbm_to_vmem [thread:$0]  (!%p1870_p7), %s382_s27, 64, %s385_s4, %s373_s28  }
  0x57   : > { %s395_s9 = scalar_lea.vmem [#allocation7], %s1146_s30  ;;  %s392_s29 = scalar_lea.sflag [#allocation8], %s391_s22 }
  0x58   : > { %s402_s13 = sshll.u32 %s395_s9, 4  ;;  %s1695_s2 = smov [#allocation7]   ;;  %s403_s13 = int_to_ptr.vmem [resolvable:$true] %s402_s13 }
  0x59   : > { %s1550_s12 = scalar_lea.vmem %s403_s13, 64  ;;  %s1555_s24 = sshll.u32 %s1695_s2, 4  ;;  %s1556_s24 = int_to_ptr.vmem [resolvable:$false] %s1555_s24 }
  0x5a   : > { %p1551_p3 = scmp.ne.s32.totalorder %s403_s13, %s1550_s12  ;;  %s1557_s0 = scalar_lea.vmem %s1556_s24, 128 }
  0x5b   : > { %p1558_p9 = scmp.lt.s32.totalorder %s403_s13, %s1556_s24  ;;  %p1559_p13 = scmp.lt.s32.totalorder %s1557_s0, %s1550_s12 }
  0x5c   : > { %p1553_p10 = pnand %p1551_p3, %p1511_p1 }
  0x5d   : > { %p1560_p2 = por %p1559_p13, %p1558_p9 }
  0x5e   : > { %p1554_p11 = pneg %p1553_p10 }
  0x60   : > { %p1561_p4 = pnand %p1560_p2, %p1554_p11 }
  0x62   : > { %1564 = shalt.err (!%p1561_p4)
}
  0x63   : > { %1332 = dma.hbm_to_vmem [thread:$0]  (!%p1870_p7), %s1877_s11, 64, %s403_s13, %s392_s29  }
  0x64   : > { %411 = sbr.rel (%p1805_p8) target bundleno = 1095 (0x447), region = 56  ;;  %s1896_s4 = sand.u32 (!%p1805_p8), 1, %s1671_s14  }
  0x65   : > { %s1151_s28 = sshll.u32 (!%p1805_p8), %s1896_s4, 2  ;;  %s414_s30 = scalar_lea.sflag (!%p1805_p8), [#allocation5], %s1896_s4 }
  0x66   : > { %s1900_s27 = scalar_lea.vmem (!%p1805_p8), [#allocation4], %s1151_s28  ;;  %p2088_p1 = scmp.ne.s32.totalorder (!%p1805_p8), %s2075_s21, 0 }
  0x69   : > { %1642 = dma.done.wait (%p2088_p1), %s414_s30, 64  }
  0x6a   : > { %1644 = vsyncadd (%p2088_p1), %s414_s30, 4294967232  ;;  %s422_s6 = sand.u32 1, %s1786_s19   ;;  %s1907_s11 = scalar_lea.vmem [#allocation7], %s1151_s28 }
  0x6b   : > { %s423_s23 = scalar_lea.sflag [#allocation8], %s422_s6 }
  0x6c   : > { %1646 = dma.done.wait (%p2088_p1), %s423_s23, 64  }
  0x6d   : > { %1648 = vsyncadd (%p2088_p1), %s423_s23, 4294967232  ;;  %p2089_p8 = scmp.eq.s32.totalorder %s1786_s19, 0 }
  0x6f   : > { %1650 = dma.done.wait (%p2089_p8), [#allocation8], 1024   ;;  %p2090_p7 = pmov %p2089_p8 }
  0x71   : > { %1652 = vsyncadd (%p2090_p7), [#allocation8], 4294966272  ;;  %p2091_p6 = pmov %p2090_p7 }
  0x73   : > { %1654 = dma.done.wait (%p2091_p6), [#allocation11], 2048   ;;  %p2092_p12 = pmov %p2091_p6 }
  0x74   : > { %v1696_v0 = vmov 0.0   ;;  %vm1697_vm0 = vmmov 0   ;;  %v1403_v1 = vld [vmem:[#allocation10 + $0x38] sm:$0xff]   ;;  %v1404_v2 = vld [vmem:[#allocation10 + $0x30] sm:$0xff]   ;;  %v1405_v3 = vld [vmem:[#allocation10 + $0x28] sm:$0xff]   ;;  %vm895_vm1 = vcmask 1043456  }
  0x75   : > { %1656 = vsyncadd (%p2092_p12), [#allocation11], 4294965248  ;;  %1224 = vmatprep.subr.bf16.mxu0 %v1696_v0  ;;  %1240 = vmatprep.mubr.msk.bf16.mxu0 %vm1697_vm0, %v1696_v0  ;;  %v1406_v4 = vld [vmem:[#allocation10 + $0x20] sm:$0xff]   ;;  %v1407_v5 = vld [vmem:[#allocation10 + $0x18] sm:$0xff]   ;;  %vm871_vm2 = vcmask 64512   ;;  %s1156_s29 = sshll.u32 %s1896_s4, 3 }
  0x76   : > { %1244 = vmatprep.subr.bf16.mxu1 %v1696_v0  ;;  %1260 = vmatprep.mubr.msk.bf16.mxu1 %vm1697_vm0, %v1696_v0  ;;  %v1419_v6 = vld [vmem:[#allocation12 + $0x38] sm:$0xff]   ;;  %v1408_v7 = vld [vmem:[#allocation10 + $0x10] sm:$0xff]   ;;  %v1409_v9 = vld [vmem:[#allocation10 + $0x8] sm:$0xff]   ;;  %s484_s12 = scalar_lea.vmem [#allocation14], %s1156_s29  ;;  %s1189_s2 = sshll.u32 %s1679_s16, 7 }
  0x77   : > { %1225 = vmatpush3.bf16.msra.mxu0 %v1403_v1  ;;  %1245 = vmatpush3.bf16.msra.mxu1 %v1419_v6  ;;  %v1420_v8 = vld [vmem:[#allocation12 + $0x30] sm:$0xff]   ;;  %v1421_v10 = vld [vmem:[#allocation12 + $0x28] sm:$0xff]   ;;  %v1410_v11 = vld [vmem:[#allocation10] sm:$0xff]   ;;  %s973_s28 = scalar_lea.hbm %s2062_s10, %s1189_s2  ;;  %s975_s30 = sshll.u32 %s484_s12, 4  ;;  %s976_s30 = int_to_ptr.vmem [resolvable:$true] %s975_s30 }
  0x78   : > { %1226 = vmatprep.subr.bf16.mxu0 %v1696_v0  ;;  %1246 = vmatprep.subr.bf16.mxu1 %v1696_v0  ;;  %v1422_v12 = vld [vmem:[#allocation12 + $0x20] sm:$0xff]   ;;  %v490_v13 = vld [vmem:[%s1907_s11] sm:$0xf]  ;;  %v1412_v16 = vld [vmem:[#allocation9 + $0x30] sm:$0xff]   ;;  %s1565_s6 = scalar_lea.vmem %s976_s30, 128  ;;  %s1698_s23 = smov [#allocation14]  }
  0x79   : > { %v1411_v14 = vld [vmem:[#allocation9 + $0x38] sm:$0xff]   ;;  %v1413_v17 = vld [vmem:[#allocation9 + $0x28] sm:$0xff]   ;;  %v1414_v18 = vld [vmem:[#allocation9 + $0x20] sm:$0xff]   ;;  %p1566_p0 = scmp.ne.s32.totalorder %s976_s30, %s1565_s6  ;;  %s1569_s11 = sshll.u32 %s1698_s23, 4  ;;  %s1570_s11 = int_to_ptr.vmem [resolvable:$false] %s1569_s11 }
  0x7a   : > { %v1423_v15 = vld [vmem:[#allocation12 + $0x18] sm:$0xff]   ;;  %v1416_v20 = vld [vmem:[#allocation9 + $0x10] sm:$0xff]   ;;  %v1417_v21 = vld [vmem:[#allocation9 + $0x8] sm:$0xff]   ;;  %s1571_s19 = scalar_lea.vmem %s1570_s11, 256  ;;  %p1572_p11 = scmp.lt.s32.totalorder %s976_s30, %s1570_s11 }
  0x7b   : > { %1227 = vmatpush3.bf16.msra.mxu0 %v1404_v2  ;;  %1247 = vmatpush3.bf16.msra.mxu1 %v1420_v8  ;;  %v1415_v19 = vld [vmem:[#allocation9 + $0x18] sm:$0xff]   ;;  %v1418_v22 = vld [vmem:[#allocation9] sm:$0xff]   ;;  %v717_v23 = vld [vmem:[%s1900_s27] sm:$0xf]  ;;  %s947_s27 = scalar_lea.sflag [#allocation15], %s1896_s4  ;;  %p1567_p3 = pnand %p1566_p0, %p1851_p5 }
  0x7c   : > { %1228 = vmatprep.subr.bf16.mxu0 %v1696_v0  ;;  %1248 = vmatprep.subr.bf16.mxu1 %v1696_v0  ;;  %v1424_v24 = vld [vmem:[#allocation12 + $0x10] sm:$0xff]   ;;  %v1425_v25 = vld [vmem:[#allocation12 + $0x8] sm:$0xff]   ;;  %v1426_v26 = vld [vmem:[#allocation12] sm:$0xff]   ;;  %p1573_p9 = scmp.lt.s32.totalorder %s1571_s19, %s1565_s6 }
  0x7d   : > { %v1158_v27 = vld [vmem:[%s2057_s5] ss:$0 sm:$0xff]  ;;  %p1568_p10 = pneg %p1567_p3 }
  0x7e   : > { %v1176_v35 = vld [vmem:[%s2055_s3] ss:$0 sm:$0xff]  ;;  %p1574_p13 = por %p1573_p9, %p1572_p11 }
  0x7f   : > { %1229 = vmatpush3.bf16.msra.mxu0 %v1405_v3  ;;  %1249 = vmatpush3.bf16.msra.mxu1 %v1421_v10  ;;  %v1167_v42 = vld [vmem:[%s2059_s7] ss:$0 sm:$0xff] }
  0x80   : > { %1230 = vmatprep.subr.bf16.mxu0 %v1696_v0  ;;  %1250 = vmatprep.subr.bf16.mxu1 %v1696_v0  ;;  %p1575_p2 = pnand %p1574_p13, %p1568_p10 }
  0x83   : > { %1231 = vmatpush3.bf16.msra.mxu0 %v1406_v4  ;;  %1251 = vmatpush3.bf16.msra.mxu1 %v1422_v12 }
  0x84   : > { %1232 = vmatprep.subr.bf16.mxu0 %v1696_v0  ;;  %1252 = vmatprep.subr.bf16.mxu1 %v1696_v0 }
  0x87   : > { %1233 = vmatpush3.bf16.msra.mxu0 %v1407_v5  ;;  %1253 = vmatpush3.bf16.msra.mxu1 %v1423_v15 }
  0x88   : > { %1234 = vmatprep.subr.bf16.mxu0 %v1696_v0  ;;  %1254 = vmatprep.subr.bf16.mxu1 %v1696_v0 }
  0x8b   : > { %1235 = vmatpush3.bf16.msra.mxu0 %v1408_v7  ;;  %1255 = vmatpush3.bf16.msra.mxu1 %v1424_v24 }
  0x8c   : > { %1236 = vmatprep.subr.bf16.mxu0 %v1696_v0  ;;  %1256 = vmatprep.subr.bf16.mxu1 %v1696_v0 }
  0x8f   : > { %1237 = vmatpush3.bf16.msra.mxu0 %v1409_v9  ;;  %1257 = vmatpush3.bf16.msra.mxu1 %v1425_v25 }
  0x90   : > { %1238 = vmatprep.subr.bf16.mxu0 %v1696_v0  ;;  %1258 = vmatprep.subr.bf16.mxu1 %v1696_v0 }
  0x93   : > { %1239 = vmatpush3.bf16.msra.mxu0 %v1410_v11  ;;  %1259 = vmatpush3.bf16.msra.mxu1 %v1426_v26 }
  0x94   : > { %1264 = vmatprep.subr.bf16.mxu0 %v1696_v0  ;;  %1284 = vmatprep.subr.bf16.mxu1 %v1696_v0 }
  0x96   : > { %1241 = vmatmul.mubr.bf16.vlgmr.msra.gmra.mxu0 %v490_v13  ;;  %1261 = vmatmul.mubr.bf16.vlgmr.msra.gmra.mxu1 %v490_v13 }
  0x97   : > { %1265 = vmatpush3.bf16.msra.mxu0 %v1411_v14  ;;  %1280 = vmatprep.mubr.msk.bf16.mxu0 %vm1697_vm0, %v1696_v0 }
  0x98   : > { %1266 = vmatprep.subr.bf16.mxu0 %v1696_v0  ;;  %1286 = vmatprep.mubr.msk.bf16.mxu1 %vm1697_vm0, %v1696_v0 }
  0x9b   : > { %1267 = vmatpush3.bf16.msra.mxu0 %v1412_v16 }
  0x9c   : > { %1268 = vmatprep.subr.bf16.mxu0 %v1696_v0 }
  0x9f   : > { %1269 = vmatpush3.bf16.msra.mxu0 %v1413_v17 }
  0xa0   : > { %1270 = vmatprep.subr.bf16.mxu0 %v1696_v0 }
  0xa3   : > { %1271 = vmatpush3.bf16.msra.mxu0 %v1414_v18 }
  0xa4   : > { %1272 = vmatprep.subr.bf16.mxu0 %v1696_v0 }
  0xa7   : > { %1273 = vmatpush3.bf16.msra.mxu0 %v1415_v19 }
  0xa8   : > { %1274 = vmatprep.subr.bf16.mxu0 %v1696_v0 }
  0xab   : > { %1275 = vmatpush3.bf16.msra.mxu0 %v1416_v20 }
  0xac   : > { %1276 = vmatprep.subr.bf16.mxu0 %v1696_v0 }
  0xaf   : > { %1277 = vmatpush3.bf16.msra.mxu0 %v1417_v21 }
  0xb0   : > { %1278 = vmatprep.subr.bf16.mxu0 %v1696_v0 }
  0xb3   : > { %1279 = vmatpush3.bf16.msra.mxu0 %v1418_v22 }
  0xb6   : > { %1281 = vmatmul.mubr.bf16.vlgmr.msra.gmra.mxu0 %v717_v23 }
 0x156   : > { %v596_v28 = vpop.f32.mrf.mxu0  ;;  %v707_v43 = vpop.f32.mrf.mxu1 }
 0x157   : > { %v597_v29 = vadd.f32 %v1158_v27, %v596_v28  ;;  %v708_v44 = vadd.f32 %v1167_v42, %v707_v43 }
 0x158   : > { %v1242_v30 = vpop.f32.mrf.mxu0  ;;  %v1262_v45 = vpop.f32.mrf.mxu1 }
 0x159   : > { %v713_v31 = vpack.c.bf16 %v597_v29, %v597_v29  ;;  %v715_v46 = vpack.c.bf16 %v708_v44, %v708_v44 }
 0x15a   : > { %v599_v32 = vpop.f32.mrf.mxu0  ;;  %v710_v47 = vpop.f32.mrf.mxu1 }
 0x15b   : > { %714 = vst [vmem:[#allocation2] sm:$0xf] %v713_v31  ;;  %716 = vst [vmem:[#allocation3] sm:$0xf] %v715_v46 }
 0x15c   : > { %v1243_v33 = vpop.f32.mrf.mxu0  ;;  %v1263_v48 = vpop.f32.mrf.mxu1 }
 0x162   : > { %v830_v34 = vld [vmem:[#allocation2] sm:$0xf]  ;;  %v884_v49 = vld [vmem:[#allocation3] sm:$0xf] }
 0x163   : > { %1285 = vmatpush3.bf16.xpose.msra.mxu1 %v830_v34  ;;  %v897_v50 = vsel %vm895_vm1, %v884_v49, 0 }
 0x164   : > { %1290 = vmatprep.subr.bf16.mxu1 %v1696_v0 }
 0x176   : > { %v823_v36 = vpop.f32.mrf.mxu0 }
 0x177   : > { %v824_v37 = vadd.f32 %v1176_v35, %v823_v36 }
 0x178   : > { %v1282_v38 = vpop.f32.mrf.mxu0 }
 0x179   : > { %v829_v39 = vpack.c.bf16 %v824_v37, %v824_v37 }
 0x17a   : > { %v826_v40 = vpop.f32.mrf.mxu0 }
 0x17b   : > { %1287 = vmatmul.mubr.bf16.vlgmr.msra.gmra.mxu1 %v829_v39 }
 0x17c   : > { %v1283_v41 = vpop.f32.mrf.mxu0  ;;  %1292 = vmatprep.mubr.msk.bf16.mxu1 %vm1697_vm0, %v1696_v0  ;;  %1291 = vmatpush3.bf16.msra.mxu1 %v897_v50 }
 0x23b   : > { %v865_v51 = vpop.f32.mrf.mxu1 }
 0x23c   : > { %v872_v52 = vsel %vm871_vm2, %v865_v51, -inf }
 0x23d   : > { %873 = vmax.xlane.f32.xlu0 %v872_v52  ;;  %v1288_v53 = vpop.f32.mrf.mxu1 }
 0x23f   : > { %v868_v54 = vpop.f32.mrf.mxu1 }
 0x241   : > { %v1289_v55 = vpop.f32.mrf.mxu1 }
 0x2c6   : > { %v874_v56 = vpop.xlane.xlu0 %873 }
 0x2c7   : > { %v875_v57 = vsub.f32 %v865_v51, %v874_v56 }
 0x2c9   : > { %v876_v58 = vmul.f32 1.442695, %v875_v57 }
 0x2cb   : > { %1427 = vpow2.f32 %v876_v58 }
 0x2d8   : > { %v1428_v59 = vpop.eup %1427 }
 0x2d9   : > { %v878_v60 = vsel %vm871_vm2, %v1428_v59, 0.0 }
 0x2da   : > { %879 = vadd.xlane.f32.xlu0 %v878_v60 }
 0x363   : > { %v880_v61 = vpop.xlane.xlu0 %879 }
 0x364   : > { %1429 = vrcp.f32 %v880_v61 }
 0x371   : > { %v1430_v62 = vpop.eup %1429 }
 0x372   : > { %v882_v63 = vmul.f32 %v1430_v62, %v1428_v59 }
 0x374   : > { %v883_v0 = vpack.c.bf16 %v882_v63, %v882_v63  ;;  %940 = vst.msk [vmem:[%s484_s12] sm:$0xff] %vm871_vm2, %v882_v63 }
 0x376   : > { %1293 = vmatmul.mubr.msk.bf16.vlgmr.msra.gmra.mxu1 %vm871_vm2, %v883_v0 }
 0x377   : > { %1578 = shalt.err (!%p1575_p2)
}
 0x378   : > { %s1579_s21 = scalar_lea.hbm %s973_s28, 128  ;;  %s1583_s9 = scalar_lea.hbm %s2062_s10, 256 }
 0x379   : > { %p1580_p4 = scmp.ne.s32.totalorder %s973_s28, %s1579_s21  ;;  %p1584_p7 = scmp.lt.s32.totalorder %s973_s28, %s2062_s10 }
 0x37a   : > { %p1585_p6 = scmp.lt.s32.totalorder %s1583_s9, %s1579_s21 }
 0x37b   : > { %p1581_p1 = pnand %p1580_p4, %p1851_p5 }
 0x37c   : > { %p1586_p12 = por %p1585_p6, %p1584_p7 }
 0x37d   : > { %p1582_p8 = pneg %p1581_p1 }
 0x37f   : > { %p1587_p0 = pnand %p1586_p12, %p1582_p8 }
 0x381   : > { %1590 = shalt.err (!%p1587_p0)
}
 0x382   : > { %1313 = dma.vmem_to_hbm [thread:$0]  (%p1851_p5), %s976_s30, 128, %s973_s28, %s947_s27   ;;  %v1185_v1 = vld [vmem:[%s2060_s8] ss:$0 sm:$0xff] }
 0x383   : > { %s477_s6 = scalar_lea.vmem [#allocation13], %s1156_s29  ;;  %s2093_s21 = sld [smem:[#allocation29_spill]] }
 0x384   : > { %s961_s23 = sshll.u32 %s477_s6, 4  ;;  %s942_s28 = scalar_lea.sflag [#allocation6], %s1896_s4  ;;  %s2006_s23 = int_to_ptr.vmem [resolvable:$true] %s961_s23 }
 0x385   : > { %s1591_s30 = scalar_lea.vmem %s2006_s23, 128  ;;  %s1699_s16 = smov [#allocation13]  }
 0x386   : > { %p1592_p3 = scmp.ne.s32.totalorder %s2006_s23, %s1591_s30  ;;  %s1595_s29 = sshll.u32 %s1699_s16, 4  ;;  %s1596_s29 = int_to_ptr.vmem [resolvable:$false] %s1595_s29 }
 0x387   : > { %s1597_s27 = scalar_lea.vmem %s1596_s29, 256  ;;  %p1598_p9 = scmp.lt.s32.totalorder %s2006_s23, %s1596_s29 }
 0x388   : > { %p1593_p10 = pnand %p1592_p3, %p1851_p5  ;;  %p1599_p13 = scmp.lt.s32.totalorder %s1597_s27, %s1591_s30 }
 0x389   : > { %s2004_s22 = scalar_lea.hbm %s2093_s21, %s1189_s2 }
 0x38a   : > { %p1594_p11 = pneg %p1593_p10  ;;  %p1600_p2 = por %p1599_p13, %p1598_p9 }
 0x38c   : > { %p1601_p4 = pnand %p1600_p2, %p1594_p11 }
 0x436   : > { %v933_v2 = vpop.f32.mrf.mxu1 }
 0x437   : > { %v934_v3 = vadd.f32 %v1185_v1, %v933_v2 }
 0x438   : > { %v1294_v4 = vpop.f32.mrf.mxu1 }
 0x439   : > { %939 = vst [vmem:[%s477_s6] sm:$0xff] %v934_v3 }
 0x43a   : > { %v936_v5 = vpop.f32.mrf.mxu1 }
 0x43b   : > { %1604 = shalt.err (!%p1601_p4)
}
 0x43c   : > { %s1605_s2 = scalar_lea.hbm %s2004_s22, 128  ;;  %s1609_s9 = scalar_lea.hbm %s2093_s21, 256 }
 0x43d   : > { %p1606_p1 = scmp.ne.s32.totalorder %s2004_s22, %s1605_s2  ;;  %p1610_p6 = scmp.lt.s32.totalorder %s2004_s22, %s2093_s21 }
 0x43e   : > { %p1611_p12 = scmp.lt.s32.totalorder %s1609_s9, %s1605_s2 }
 0x43f   : > { %p1607_p8 = pnand %p1606_p1, %p1851_p5 }
 0x440   : > { %p1612_p0 = por %p1611_p12, %p1610_p6 }
 0x441   : > { %p1608_p7 = pneg %p1607_p8 }
 0x443   : > { %p1613_p3 = pnand %p1612_p0, %p1608_p7 }
 0x445   : > { %1616 = shalt.err (!%p1613_p3)
}
 0x446   : > { %1312 = dma.vmem_to_hbm [thread:$0]  (%p1851_p5), %s2006_s23, 128, %s2004_s22, %s942_s28   ;;  %v1295_v6 = vpop.f32.mrf.mxu1 }
 0x447 PF: > { %s2094_s24 = sld [smem:[#allocation22_spill]]  ;;  %p2097_p11 = scmp.ge.s32.totalorder %s1687_s18, 2 }
 0x448   : > { %s2095_s0 = sld [smem:[#allocation23_spill]] }
 0x44d   : > { %s987_s6 = sand.u32 1, %s2094_s24  }
 0x44e   : > { %p2096_p10 = scmp.ne.s32.totalorder %s2095_s0, 0  ;;  %s988_s11 = scalar_lea.sflag [#allocation6], %s987_s6 }
 0x450   : > { %p1334_p9 = pnand %p2097_p11, %p2096_p10 }
 0x452   : > { %p1335_p13 = pneg %p1334_p9 }
 0x454   : > { %1658 = dma.done.wait (%p1335_p13), %s988_s11, 128  }
 0x455   : > { %1660 = vsyncadd (%p1335_p13), %s988_s11, 4294967168  ;;  %s997_s19 = scalar_lea.sflag [#allocation15], %s987_s6 }
 0x456   : > { %1662 = dma.done.wait (%p1335_p13), %s997_s19, 128  }
 0x457   : > { %1664 = vsyncadd (%p1335_p13), %s997_s19, 4294967168  ;;  %s34_s18 = sadd.s32 1, %s1687_s18   ;;  %s2098_s26 = sld [smem:[#allocation24_spill]] }
 0x458   : > { %p31_p2 = scmp.ge.s32.totalorder %s34_s18, 4   ;;  %s2099_s13 = smov %s1671_s14 }
 0x459   : > { %s2100_s14 = smov %s1675_s15  ;;  %s2101_s15 = smov %s1863_s20 }
 0x45a   : > { %s2102_s16 = smov %s1683_s17  ;;  %33 = sbr.rel (!%p31_p2) target bundleno = 17 (0x11), region = 147 }
 0x45d   : > { %s2103_s17 = smov %s2098_s26 }
 0x45f   :  { %1002 = vsyncpa [#allocation5], 1 }
 0x460   :  { %1004 = vsyncpa [#allocation5 + $0x1], 1 }
 0x461   :  { %1005 = vsyncpa [#allocation8], 1 }
 0x462   :  { %1007 = vsyncpa [#allocation8 + $0x1], 1 }
 0x463   :  { %1008 = vsyncpa [#allocation11], 1 }
 0x464   :  { %1009 = vsyncpa [#allocation6], 1 }
 0x465   :  { %1011 = vsyncpa [#allocation6 + $0x1], 1 }
 0x466   :  { %1012 = vsyncpa [#allocation15], 1 }
 0x467   :  { %1014 = vsyncpa [#allocation15 + $0x1], 1 }

// kernel: tpu_custom_call.1
= control target key start
LH: loop header
LB: loop body
LE: loop exit
PB: predicated region body
PF: predicated region fallthrough
CT: control target
= control target key end

     0   :  { %s2052_s0 = inlined_call_operand.hbm [shape: bf16[2,8,128], index: 0, kind: input, shape index: {}]   ;;  %s2053_s1 = inlined_call_operand.hbm [shape: bf16[2,8,128], index: 1, kind: input, shape index: {}]   ;;  %s2054_s2 = inlined_call_operand.hbm [shape: bf16[128,128], index: 2, kind: input, shape index: {}]   ;;  %s2055_s3 = inlined_call_operand.vmem [shape: f32[1,128], index: 3, kind: input, shape index: {}]   ;;  %s2056_s4 = inlined_call_operand.hbm [shape: bf16[128,128], index: 4, kind: input, shape index: {}]   ;;  %s2057_s5 = inlined_call_operand.vmem [shape: f32[1,128], index: 5, kind: input, shape index: {}]   ;;  %s2058_s6 = inlined_call_operand.hbm [shape: bf16[128,128], index: 6, kind: input, shape index: {}]   ;;  %s2059_s7 = inlined_call_operand.vmem [shape: f32[1,128], index: 7, kind: input, shape index: {}]   ;;  %s2060_s8 = inlined_call_operand.vmem [shape: f32[1,128], index: 8, kind: input, shape index: {}]   ;;  %s2061_s9 = inlined_call_operand.hbm [shape: f32[2,8,128], index: 9, kind: output, shape index: {0}]   ;;  %s2062_s10 = inlined_call_operand.hbm [shape: f32[2,8,8], index: 10, kind: output, shape index: {1}]  }
   0x1   :  { %2069 = sst [smem:[#allocation25_spill]] %s2052_s0 }
   0x2   :  { %2070 = sst [smem:[#allocation26_spill]] %s2054_s2 }
   0x3   :  { %2071 = sst [smem:[#allocation27_spill]] %s2056_s4 }
   0x4   :  { %2072 = sst [smem:[#allocation28_spill]] %s2058_s6 }
   0x5   :  { %2073 = sst [smem:[#allocation29_spill]] %s2061_s9 }
   0x6   :  { %16 = vsyncpa [#allocation5], 0 }
   0x7   :  { %18 = vsyncpa [#allocation5 + $0x1], 0 }
   0x8   :  { %19 = vsyncpa [#allocation8], 0 }
   0x9   :  { %21 = vsyncpa [#allocation8 + $0x1], 0 }
   0xa   :  { %22 = vsyncpa [#allocation11], 0 }
   0xb   :  { %23 = vsyncpa [#allocation6], 0 }
   0xc   :  { %25 = vsyncpa [#allocation6 + $0x1], 0 }
   0xd   :  { %26 = vsyncpa [#allocation15], 0 }
   0xe   :  { %28 = vsyncpa [#allocation15 + $0x1], 0  ;;  %s1755_s13 = smov 0   ;;  %s1757_s14 = smov 0  }
   0xf   :  { %s1759_s15 = smov 0   ;;  %s1761_s16 = smov 0  }
  0x10   :  { %s1763_s17 = smov 0   ;;  %s1765_s18 = smov 0  }
  0x11 LB: > { %2074 = sst [smem:[#allocation22_spill]] %s1667_s13  ;;  %s1786_s19 = sadd.s32 4294967295, %s1687_s18   ;;  %s1687_s18 = sphi %s1765_s18, %s34_s18   ;;  %s1683_s17 = sphi %s1763_s17, %s2103_s17   ;;  %s1679_s16 = sphi %s1761_s16, %s2102_s16   ;;  %s1675_s15 = sphi %s1759_s15, %s2101_s15   ;;  %s1671_s14 = sphi %s1757_s14, %s2100_s14   ;;  %s1667_s13 = sphi %s1755_s13, %s2099_s13  }
  0x12   : > { %s1140_s20 = sadd.s32 4294967294, %s1687_s18   ;;  %p68_p0 = scmp.ne.s32.totalorder %s1671_s14, %s1667_s13 }
  0x13   : > { %p2063_p1 = scmp.eq.s32.totalorder %s1786_s19, 0  ;;  %p273_p3 = scmp.eq.s32.totalorder %s1140_s20, 1 }
  0x14   : > { %p1141_p5 = scmp.ge.s32.totalorder %s1687_s18, 1  ;;  %p308_p7 = scmp.lt.s32.totalorder %s1687_s18, 3 }
  0x15   : > { %p1795_p4 = por %p2063_p1, %p68_p0  ;;  %p1800_p6 = por %p273_p3, %p68_p0 }
  0x16   : > { %p1805_p8 = pnand %p1141_p5, %p308_p7  ;;  %s1689_s24 = smov [#allocation9]  }
  0x17   : > { %s2075_s21 = scalar_select %p1795_p4, 1, 0 }
  0x18   : > { %s2076_s22 = scalar_select %p1800_p6, 1, 0 }
  0x19   : > { %s320_s25 = sshll.u32 %s1689_s24, 4  ;;  %p1316_p9 = pneg %p1805_p8  ;;  %s321_s25 = int_to_ptr.vmem [resolvable:$true] %s320_s25 }
  0x1a   : > { %2077 = sst [smem:[#allocation23_spill]] %s2076_s22  ;;  %s1690_s27 = smov [#allocation10]  }
  0x1b   : > { %p1814_p11 = pnand %p1316_p9, %p2063_p1  ;;  %s336_s28 = sshll.u32 %s1690_s27, 4  ;;  %s337_s28 = int_to_ptr.vmem [resolvable:$true] %s336_s28 }
  0x1c   : > { %s1691_s29 = smov [#allocation12]   ;;  %s1442_s11 = scalar_lea.vmem %s321_s25, 1024 }
  0x1d   : > { %s352_s30 = sshll.u32 %s1691_s29, 4  ;;  %p1433_p12 = pneg %p1814_p11  ;;  %s353_s30 = int_to_ptr.vmem [resolvable:$true] %s352_s30 }
  0x1e   : > { %p1443_p13 = scmp.ne.s32.totalorder %s321_s25, %s1442_s11  ;;  %p1450_p5 = scmp.lt.s32.totalorder %s321_s25, %s321_s25 }
  0x1f   : > { %p1451_p7 = scmp.lt.s32.totalorder %s1442_s11, %s1442_s11 }
  0x20   : > { %p1445_p0 = pnand %p1443_p13, %p1433_p12 }
  0x21   : > { %p1452_p9 = por %p1451_p7, %p1450_p5 }
  0x22   : > { %p1446_p3 = pneg %p1445_p0 }
  0x24   : > { %p1453_p10 = pnand %p1452_p9, %p1446_p3 }
  0x26   : > { %1456 = shalt.err (!%p1453_p10)
}
  0x27   : > { %s1692_s12 = smov 64   ;;  %s1693_s20 = smov 4  }
  0x28   : > { %s2080_s2 = sld [smem:[#allocation26_spill]]  ;;  %s1468_s29 = scalar_lea.vmem %s337_s28, 1024 }
  0x29   : > { %p1469_p1 = scmp.ne.s32.totalorder %s337_s28, %s1468_s29  ;;  %p1476_p2 = scmp.lt.s32.totalorder %s337_s28, %s337_s28 }
  0x2a   : > { %p1477_p6 = scmp.lt.s32.totalorder %s1468_s29, %s1468_s29 }
  0x2b   : > { %p1471_p13 = pnand %p1469_p1, %p1433_p12 }
  0x2c   : > { %p1478_p5 = por %p1477_p6, %p1476_p2 }
  0x2d   : > { %p1472_p0 = pneg %p1471_p13 }
  0x2e   : > { %1319 = dma.hbm_to_vmem [thread:$0]  (!%p1814_p11), %s2080_s2, 1024, %s321_s25, [#allocation8], %s1692_s12, %s1692_s12, %s1693_s20  }
  0x2f   : > { %p1479_p3 = pnand %p1478_p5, %p1472_p0 }
  0x31   : > { %1482 = shalt.err (!%p1479_p3)
}
  0x32   : > { %s2081_s4 = sld [smem:[#allocation27_spill]]  ;;  %s1494_s25 = scalar_lea.vmem %s353_s30, 1024 }
  0x33   : > { %p1495_p10 = scmp.ne.s32.totalorder %s353_s30, %s1494_s25  ;;  %p1502_p9 = scmp.lt.s32.totalorder %s353_s30, %s353_s30 }
  0x34   : > { %p1503_p13 = scmp.lt.s32.totalorder %s1494_s25, %s1494_s25 }
  0x35   : > { %p1497_p7 = pnand %p1495_p10, %p1433_p12 }
  0x36   : > { %p1504_p4 = por %p1503_p13, %p1502_p9 }
  0x37   : > { %p1498_p1 = pneg %p1497_p7 }
  0x38   : > { %1322 = dma.hbm_to_vmem [thread:$0]  (!%p1814_p11), %s2081_s4, 1024, %s337_s28, [#allocation11], %s1692_s12, %s1692_s12, %s1693_s20  }
  0x39   : > { %p1505_p2 = pnand %p1504_p4, %p1498_p1 }
  0x3b   : > { %1508 = shalt.err (!%p1505_p2)
}
  0x3c   : > { %s2082_s6 = sld [smem:[#allocation28_spill]]  ;;  %s55_s22 = sadd.s32 1, %s1675_s15 }
  0x3d   : > { %s46_s28 = sadd.s32 1, %s1683_s17  ;;  %p62_p4 = scmp.ne.s32.totalorder %s1675_s15, %s1671_s14 }
  0x3e   : > { %p48_p6 = scmp.ge.s32.totalorder %s46_s28, 2  ;;  %p63_p12 = scmp.eq.s32.totalorder %s1687_s18, 0 }
  0x3f   : > { %p2083_p0 = scmp.eq.s32.totalorder %s1786_s19, 1  ;;  %p1343_p3 = scmp.lt.s32.totalorder %s1687_s18, 2 }
  0x40   : > { %s2105_s28 = smov (%p48_p6, %s46_s28), 0  ;;  %p64_p10 = por %p63_p12, %p62_p4 }
  0x41   : > { %p1851_p5 = por %p2083_p0, %p62_p4  ;;  %2085 = sst [smem:[#allocation24_spill]] %s2105_s28 }
  0x42   : > { %1325 = dma.hbm_to_vmem [thread:$0]  (!%p1814_p11), %s2082_s6, 1024, %s353_s30, [#allocation11], %s1692_s12, %s1692_s12, %s1693_s20  }
  0x43   : > { %s372_s29 = sand.u32 1, %s1675_s15   ;;  %s50_s11 = ssub.s32 %s1683_s17, %s2105_s28 }
  0x44   : > { %p53_p11 = scmp.eq.s32.totalorder %s50_s11, 0  ;;  %s1146_s30 = sshll.u32 %s372_s29, 2 }
  0x45   : > { %s1147_s12 = sshll.u32 %s1683_s17, 6  ;;  %s2086_s0 = sld [smem:[#allocation25_spill]] }
  0x46   : > { %s1863_s20 = scalar_select %p53_p11, %s1675_s15, %s55_s22  }
  0x47   : > { %s376_s2 = scalar_lea.vmem [#allocation4], %s1146_s30  ;;  %p1870_p7 = pnand %p1343_p3, %p64_p10 }
  0x48   : > { %s384_s4 = sshll.u32 %s376_s2, 4  ;;  %s1877_s11 = scalar_lea.hbm %s2053_s1, %s1147_s12  ;;  %s385_s4 = int_to_ptr.vmem [resolvable:$true] %s384_s4 }
  0x49   : > { %s391_s22 = sand.u32 1, %s1687_s18   ;;  %s373_s28 = scalar_lea.sflag [#allocation5], %s372_s29 }
  0x4a   : > { %p1511_p1 = pneg %p1870_p7  ;;  %s1522_s25 = scalar_lea.vmem %s385_s4, 64 }
  0x4b   : > { %s382_s27 = scalar_lea.hbm %s2086_s0, %s1147_s12  ;;  %p1523_p9 = scmp.ne.s32.totalorder %s385_s4, %s1522_s25 }
  0x4c   : > { %s1694_s2 = smov [#allocation4]  }
  0x4d   : > { %p1525_p13 = pnand %p1523_p9, %p1511_p1  ;;  %s1527_s24 = sshll.u32 %s1694_s2, 4  ;;  %s1528_s24 = int_to_ptr.vmem [resolvable:$false] %s1527_s24 }
  0x4e   : > { %s1529_s0 = scalar_lea.vmem %s1528_s24, 128  ;;  %p1530_p4 = scmp.lt.s32.totalorder %s385_s4, %s1528_s24 }
  0x4f   : > { %p1526_p2 = pneg %p1525_p13  ;;  %p1531_p6 = scmp.lt.s32.totalorder %s1529_s0, %s1522_s25 }
  0x51   : > { %p1532_p12 = por %p1531_p6, %p1530_p4 }
  0x53   : > { %p1533_p0 = pnand %p1532_p12, %p1526_p2 }
  0x55   : > { %1536 = shalt.err (!%p1533_p0)
}
  0x56   : > { %1329 = dma.hbm_to_vmem [thread:$0]  (!%p1870_p7), %s382_s27, 64, %s385_s4, %s373_s28  }
  0x57   : > { %s395_s9 = scalar_lea.vmem [#allocation7], %s1146_s30  ;;  %s392_s29 = scalar_lea.sflag [#allocation8], %s391_s22 }
  0x58   : > { %s402_s13 = sshll.u32 %s395_s9, 4  ;;  %s1695_s2 = smov [#allocation7]   ;;  %s403_s13 = int_to_ptr.vmem [resolvable:$true] %s402_s13 }
  0x59   : > { %s1550_s12 = scalar_lea.vmem %s403_s13, 64  ;;  %s1555_s24 = sshll.u32 %s1695_s2, 4  ;;  %s1556_s24 = int_to_ptr.vmem [resolvable:$false] %s1555_s24 }
  0x5a   : > { %p1551_p3 = scmp.ne.s32.totalorder %s403_s13, %s1550_s12  ;;  %s1557_s0 = scalar_lea.vmem %s1556_s24, 128 }
  0x5b   : > { %p1558_p9 = scmp.lt.s32.totalorder %s403_s13, %s1556_s24  ;;  %p1559_p13 = scmp.lt.s32.totalorder %s1557_s0, %s1550_s12 }
  0x5c   : > { %p1553_p10 = pnand %p1551_p3, %p1511_p1 }
  0x5d   : > { %p1560_p2 = por %p1559_p13, %p1558_p9 }
  0x5e   : > { %p1554_p11 = pneg %p1553_p10 }
  0x60   : > { %p1561_p4 = pnand %p1560_p2, %p1554_p11 }
  0x62   : > { %1564 = shalt.err (!%p1561_p4)
}
  0x63   : > { %1332 = dma.hbm_to_vmem [thread:$0]  (!%p1870_p7), %s1877_s11, 64, %s403_s13, %s392_s29  }
  0x64   : > { %411 = sbr.rel (%p1805_p8) target bundleno = 1095 (0x447), region = 56  ;;  %s1896_s4 = sand.u32 (!%p1805_p8), 1, %s1671_s14  }
  0x65   : > { %s1151_s28 = sshll.u32 (!%p1805_p8), %s1896_s4, 2  ;;  %s414_s30 = scalar_lea.sflag (!%p1805_p8), [#allocation5], %s1896_s4 }
  0x66   : > { %s1900_s27 = scalar_lea.vmem (!%p1805_p8), [#allocation4], %s1151_s28  ;;  %p2088_p1 = scmp.ne.s32.totalorder (!%p1805_p8), %s2075_s21, 0 }
  0x69   : > { %1642 = dma.done.wait (%p2088_p1), %s414_s30, 64  }
  0x6a   : > { %1644 = vsyncadd (%p2088_p1), %s414_s30, 4294967232  ;;  %s422_s6 = sand.u32 1, %s1786_s19   ;;  %s1907_s11 = scalar_lea.vmem [#allocation7], %s1151_s28 }
  0x6b   : > { %s423_s23 = scalar_lea.sflag [#allocation8], %s422_s6 }
  0x6c   : > { %1646 = dma.done.wait (%p2088_p1), %s423_s23, 64  }
  0x6d   : > { %1648 = vsyncadd (%p2088_p1), %s423_s23, 4294967232  ;;  %p2089_p8 = scmp.eq.s32.totalorder %s1786_s19, 0 }
  0x6f   : > { %1650 = dma.done.wait (%p2089_p8), [#allocation8], 1024   ;;  %p2090_p7 = pmov %p2089_p8 }
  0x71   : > { %1652 = vsyncadd (%p2090_p7), [#allocation8], 4294966272  ;;  %p2091_p6 = pmov %p2090_p7 }
  0x73   : > { %1654 = dma.done.wait (%p2091_p6), [#allocation11], 2048   ;;  %p2092_p12 = pmov %p2091_p6 }
  0x74   : > { %v1696_v0 = vmov 0.0   ;;  %vm1697_vm0 = vmmov 0   ;;  %v1403_v1 = vld [vmem:[#allocation10 + $0x38] sm:$0xff]   ;;  %v1404_v2 = vld [vmem:[#allocation10 + $0x30] sm:$0xff]   ;;  %v1405_v3 = vld [vmem:[#allocation10 + $0x28] sm:$0xff]   ;;  %vm895_vm1 = vcmask 1043456  }
  0x75   : > { %1656 = vsyncadd (%p2092_p12), [#allocation11], 4294965248  ;;  %1224 = vmatprep.subr.bf16.mxu0 %v1696_v0  ;;  %1240 = vmatprep.mubr.msk.bf16.mxu0 %vm1697_vm0, %v1696_v0  ;;  %v1406_v4 = vld [vmem:[#allocation10 + $0x20] sm:$0xff]   ;;  %v1407_v5 = vld [vmem:[#allocation10 + $0x18] sm:$0xff]   ;;  %vm871_vm2 = vcmask 64512   ;;  %s1156_s29 = sshll.u32 %s1896_s4, 3 }
  0x76   : > { %1244 = vmatprep.subr.bf16.mxu1 %v1696_v0  ;;  %1260 = vmatprep.mubr.msk.bf16.mxu1 %vm1697_vm0, %v1696_v0  ;;  %v1419_v6 = vld [vmem:[#allocation12 + $0x38] sm:$0xff]   ;;  %v1408_v7 = vld [vmem:[#allocation10 + $0x10] sm:$0xff]   ;;  %v1409_v9 = vld [vmem:[#allocation10 + $0x8] sm:$0xff]   ;;  %s484_s12 = scalar_lea.vmem [#allocation14], %s1156_s29  ;;  %s1189_s2 = sshll.u32 %s1679_s16, 7 }
  0x77   : > { %1225 = vmatpush3.bf16.msra.mxu0 %v1403_v1  ;;  %1245 = vmatpush3.bf16.msra.mxu1 %v1419_v6  ;;  %v1420_v8 = vld [vmem:[#allocation12 + $0x30] sm:$0xff]   ;;  %v1421_v10 = vld [vmem:[#allocation12 + $0x28] sm:$0xff]   ;;  %v1410_v11 = vld [vmem:[#allocation10] sm:$0xff]   ;;  %s973_s28 = scalar_lea.hbm %s2062_s10, %s1189_s2  ;;  %s975_s30 = sshll.u32 %s484_s12, 4  ;;  %s976_s30 = int_to_ptr.vmem [resolvable:$true] %s975_s30 }
  0x78   : > { %1226 = vmatprep.subr.bf16.mxu0 %v1696_v0  ;;  %1246 = vmatprep.subr.bf16.mxu1 %v1696_v0  ;;  %v1422_v12 = vld [vmem:[#allocation12 + $0x20] sm:$0xff]   ;;  %v490_v13 = vld [vmem:[%s1907_s11] sm:$0xf]  ;;  %v1412_v16 = vld [vmem:[#allocation9 + $0x30] sm:$0xff]   ;;  %s1565_s6 = scalar_lea.vmem %s976_s30, 128  ;;  %s1698_s23 = smov [#allocation14]  }
  0x79   : > { %v1411_v14 = vld [vmem:[#allocation9 + $0x38] sm:$0xff]   ;;  %v1413_v17 = vld [vmem:[#allocation9 + $0x28] sm:$0xff]   ;;  %v1414_v18 = vld [vmem:[#allocation9 + $0x20] sm:$0xff]   ;;  %p1566_p0 = scmp.ne.s32.totalorder %s976_s30, %s1565_s6  ;;  %s1569_s11 = sshll.u32 %s1698_s23, 4  ;;  %s1570_s11 = int_to_ptr.vmem [resolvable:$false] %s1569_s11 }
  0x7a   : > { %v1423_v15 = vld [vmem:[#allocation12 + $0x18] sm:$0xff]   ;;  %v1416_v20 = vld [vmem:[#allocation9 + $0x10] sm:$0xff]   ;;  %v1417_v21 = vld [vmem:[#allocation9 + $0x8] sm:$0xff]   ;;  %s1571_s19 = scalar_lea.vmem %s1570_s11, 256  ;;  %p1572_p11 = scmp.lt.s32.totalorder %s976_s30, %s1570_s11 }
  0x7b   : > { %1227 = vmatpush3.bf16.msra.mxu0 %v1404_v2  ;;  %1247 = vmatpush3.bf16.msra.mxu1 %v1420_v8  ;;  %v1415_v19 = vld [vmem:[#allocation9 + $0x18] sm:$0xff]   ;;  %v1418_v22 = vld [vmem:[#allocation9] sm:$0xff]   ;;  %v717_v23 = vld [vmem:[%s1900_s27] sm:$0xf]  ;;  %s947_s27 = scalar_lea.sflag [#allocation15], %s1896_s4  ;;  %p1567_p3 = pnand %p1566_p0, %p1851_p5 }
  0x7c   : > { %1228 = vmatprep.subr.bf16.mxu0 %v1696_v0  ;;  %1248 = vmatprep.subr.bf16.mxu1 %v1696_v0  ;;  %v1424_v24 = vld [vmem:[#allocation12 + $0x10] sm:$0xff]   ;;  %v1425_v25 = vld [vmem:[#allocation12 + $0x8] sm:$0xff]   ;;  %v1426_v26 = vld [vmem:[#allocation12] sm:$0xff]   ;;  %p1573_p9 = scmp.lt.s32.totalorder %s1571_s19, %s1565_s6 }
  0x7d   : > { %v1158_v27 = vld [vmem:[%s2057_s5] ss:$0 sm:$0xff]  ;;  %p1568_p10 = pneg %p1567_p3 }
  0x7e   : > { %v1176_v35 = vld [vmem:[%s2055_s3] ss:$0 sm:$0xff]  ;;  %p1574_p13 = por %p1573_p9, %p1572_p11 }
  0x7f   : > { %1229 = vmatpush3.bf16.msra.mxu0 %v1405_v3  ;;  %1249 = vmatpush3.bf16.msra.mxu1 %v1421_v10  ;;  %v1167_v42 = vld [vmem:[%s2059_s7] ss:$0 sm:$0xff] }
  0x80   : > { %1230 = vmatprep.subr.bf16.mxu0 %v1696_v0  ;;  %1250 = vmatprep.subr.bf16.mxu1 %v1696_v0  ;;  %p1575_p2 = pnand %p1574_p13, %p1568_p10 }
  0x83   : > { %1231 = vmatpush3.bf16.msra.mxu0 %v1406_v4  ;;  %1251 = vmatpush3.bf16.msra.mxu1 %v1422_v12 }
  0x84   : > { %1232 = vmatprep.subr.bf16.mxu0 %v1696_v0  ;;  %1252 = vmatprep.subr.bf16.mxu1 %v1696_v0 }
  0x87   : > { %1233 = vmatpush3.bf16.msra.mxu0 %v1407_v5  ;;  %1253 = vmatpush3.bf16.msra.mxu1 %v1423_v15 }
  0x88   : > { %1234 = vmatprep.subr.bf16.mxu0 %v1696_v0  ;;  %1254 = vmatprep.subr.bf16.mxu1 %v1696_v0 }
  0x8b   : > { %1235 = vmatpush3.bf16.msra.mxu0 %v1408_v7  ;;  %1255 = vmatpush3.bf16.msra.mxu1 %v1424_v24 }
  0x8c   : > { %1236 = vmatprep.subr.bf16.mxu0 %v1696_v0  ;;  %1256 = vmatprep.subr.bf16.mxu1 %v1696_v0 }
  0x8f   : > { %1237 = vmatpush3.bf16.msra.mxu0 %v1409_v9  ;;  %1257 = vmatpush3.bf16.msra.mxu1 %v1425_v25 }
  0x90   : > { %1238 = vmatprep.subr.bf16.mxu0 %v1696_v0  ;;  %1258 = vmatprep.subr.bf16.mxu1 %v1696_v0 }
  0x93   : > { %1239 = vmatpush3.bf16.msra.mxu0 %v1410_v11  ;;  %1259 = vmatpush3.bf16.msra.mxu1 %v1426_v26 }
  0x94   : > { %1264 = vmatprep.subr.bf16.mxu0 %v1696_v0  ;;  %1284 = vmatprep.subr.bf16.mxu1 %v1696_v0 }
  0x96   : > { %1241 = vmatmul.mubr.bf16.vlgmr.msra.gmra.mxu0 %v490_v13  ;;  %1261 = vmatmul.mubr.bf16.vlgmr.msra.gmra.mxu1 %v490_v13 }
  0x97   : > { %1265 = vmatpush3.bf16.msra.mxu0 %v1411_v14  ;;  %1280 = vmatprep.mubr.msk.bf16.mxu0 %vm1697_vm0, %v1696_v0 }
  0x98   : > { %1266 = vmatprep.subr.bf16.mxu0 %v1696_v0  ;;  %1286 = vmatprep.mubr.msk.bf16.mxu1 %vm1697_vm0, %v1696_v0 }
  0x9b   : > { %1267 = vmatpush3.bf16.msra.mxu0 %v1412_v16 }
  0x9c   : > { %1268 = vmatprep.subr.bf16.mxu0 %v1696_v0 }
  0x9f   : > { %1269 = vmatpush3.bf16.msra.mxu0 %v1413_v17 }
  0xa0   : > { %1270 = vmatprep.subr.bf16.mxu0 %v1696_v0 }
  0xa3   : > { %1271 = vmatpush3.bf16.msra.mxu0 %v1414_v18 }
  0xa4   : > { %1272 = vmatprep.subr.bf16.mxu0 %v1696_v0 }
  0xa7   : > { %1273 = vmatpush3.bf16.msra.mxu0 %v1415_v19 }
  0xa8   : > { %1274 = vmatprep.subr.bf16.mxu0 %v1696_v0 }
  0xab   : > { %1275 = vmatpush3.bf16.msra.mxu0 %v1416_v20 }
  0xac   : > { %1276 = vmatprep.subr.bf16.mxu0 %v1696_v0 }
  0xaf   : > { %1277 = vmatpush3.bf16.msra.mxu0 %v1417_v21 }
  0xb0   : > { %1278 = vmatprep.subr.bf16.mxu0 %v1696_v0 }
  0xb3   : > { %1279 = vmatpush3.bf16.msra.mxu0 %v1418_v22 }
  0xb6   : > { %1281 = vmatmul.mubr.bf16.vlgmr.msra.gmra.mxu0 %v717_v23 }
 0x156   : > { %v596_v28 = vpop.f32.mrf.mxu0  ;;  %v707_v43 = vpop.f32.mrf.mxu1 }
 0x157   : > { %v597_v29 = vadd.f32 %v1158_v27, %v596_v28  ;;  %v708_v44 = vadd.f32 %v1167_v42, %v707_v43 }
 0x158   : > { %v1242_v30 = vpop.f32.mrf.mxu0  ;;  %v1262_v45 = vpop.f32.mrf.mxu1 }
 0x159   : > { %v713_v31 = vpack.c.bf16 %v597_v29, %v597_v29  ;;  %v715_v46 = vpack.c.bf16 %v708_v44, %v708_v44 }
 0x15a   : > { %v599_v32 = vpop.f32.mrf.mxu0  ;;  %v710_v47 = vpop.f32.mrf.mxu1 }
 0x15b   : > { %714 = vst [vmem:[#allocation2] sm:$0xf] %v713_v31  ;;  %716 = vst [vmem:[#allocation3] sm:$0xf] %v715_v46 }
 0x15c   : > { %v1243_v33 = vpop.f32.mrf.mxu0  ;;  %v1263_v48 = vpop.f32.mrf.mxu1 }
 0x162   : > { %v830_v34 = vld [vmem:[#allocation2] sm:$0xf]  ;;  %v884_v49 = vld [vmem:[#allocation3] sm:$0xf] }
 0x163   : > { %1285 = vmatpush3.bf16.xpose.msra.mxu1 %v830_v34  ;;  %v897_v50 = vsel %vm895_vm1, %v884_v49, 0 }
 0x164   : > { %1290 = vmatprep.subr.bf16.mxu1 %v1696_v0 }
 0x176   : > { %v823_v36 = vpop.f32.mrf.mxu0 }
 0x177   : > { %v824_v37 = vadd.f32 %v1176_v35, %v823_v36 }
 0x178   : > { %v1282_v38 = vpop.f32.mrf.mxu0 }
 0x179   : > { %v829_v39 = vpack.c.bf16 %v824_v37, %v824_v37 }
 0x17a   : > { %v826_v40 = vpop.f32.mrf.mxu0 }
 0x17b   : > { %1287 = vmatmul.mubr.bf16.vlgmr.msra.gmra.mxu1 %v829_v39 }
 0x17c   : > { %v1283_v41 = vpop.f32.mrf.mxu0  ;;  %1292 = vmatprep.mubr.msk.bf16.mxu1 %vm1697_vm0, %v1696_v0  ;;  %1291 = vmatpush3.bf16.msra.mxu1 %v897_v50 }
 0x23b   : > { %v865_v51 = vpop.f32.mrf.mxu1 }
 0x23c   : > { %v872_v52 = vsel %vm871_vm2, %v865_v51, -inf }
 0x23d   : > { %873 = vmax.xlane.f32.xlu0 %v872_v52  ;;  %v1288_v53 = vpop.f32.mrf.mxu1 }
 0x23f   : > { %v868_v54 = vpop.f32.mrf.mxu1 }
 0x241   : > { %v1289_v55 = vpop.f32.mrf.mxu1 }
 0x2c6   : > { %v874_v56 = vpop.xlane.xlu0 %873 }
 0x2c7   : > { %v875_v57 = vsub.f32 %v865_v51, %v874_v56 }
 0x2c9   : > { %v876_v58 = vmul.f32 1.442695, %v875_v57 }
 0x2cb   : > { %1427 = vpow2.f32 %v876_v58 }
 0x2d8   : > { %v1428_v59 = vpop.eup %1427 }
 0x2d9   : > { %v878_v60 = vsel %vm871_vm2, %v1428_v59, 0.0 }
 0x2da   : > { %879 = vadd.xlane.f32.xlu0 %v878_v60 }
 0x363   : > { %v880_v61 = vpop.xlane.xlu0 %879 }
 0x364   : > { %1429 = vrcp.f32 %v880_v61 }
 0x371   : > { %v1430_v62 = vpop.eup %1429 }
 0x372   : > { %v882_v63 = vmul.f32 %v1430_v62, %v1428_v59 }
 0x374   : > { %v883_v0 = vpack.c.bf16 %v882_v63, %v882_v63  ;;  %940 = vst.msk [vmem:[%s484_s12] sm:$0xff] %vm871_vm2, %v882_v63 }
 0x376   : > { %1293 = vmatmul.mubr.msk.bf16.vlgmr.msra.gmra.mxu1 %vm871_vm2, %v883_v0 }
 0x377   : > { %1578 = shalt.err (!%p1575_p2)
}
 0x378   : > { %s1579_s21 = scalar_lea.hbm %s973_s28, 128  ;;  %s1583_s9 = scalar_lea.hbm %s2062_s10, 256 }
 0x379   : > { %p1580_p4 = scmp.ne.s32.totalorder %s973_s28, %s1579_s21  ;;  %p1584_p7 = scmp.lt.s32.totalorder %s973_s28, %s2062_s10 }
 0x37a   : > { %p1585_p6 = scmp.lt.s32.totalorder %s1583_s9, %s1579_s21 }
 0x37b   : > { %p1581_p1 = pnand %p1580_p4, %p1851_p5 }
 0x37c   : > { %p1586_p12 = por %p1585_p6, %p1584_p7 }
 0x37d   : > { %p1582_p8 = pneg %p1581_p1 }
 0x37f   : > { %p1587_p0 = pnand %p1586_p12, %p1582_p8 }
 0x381   : > { %1590 = shalt.err (!%p1587_p0)
}
 0x382   : > { %1313 = dma.vmem_to_hbm [thread:$0]  (%p1851_p5), %s976_s30, 128, %s973_s28, %s947_s27   ;;  %v1185_v1 = vld [vmem:[%s2060_s8] ss:$0 sm:$0xff] }
 0x383   : > { %s477_s6 = scalar_lea.vmem [#allocation13], %s1156_s29  ;;  %s2093_s21 = sld [smem:[#allocation29_spill]] }
 0x384   : > { %s961_s23 = sshll.u32 %s477_s6, 4  ;;  %s942_s28 = scalar_lea.sflag [#allocation6], %s1896_s4  ;;  %s2006_s23 = int_to_ptr.vmem [resolvable:$true] %s961_s23 }
 0x385   : > { %s1591_s30 = scalar_lea.vmem %s2006_s23, 128  ;;  %s1699_s16 = smov [#allocation13]  }
 0x386   : > { %p1592_p3 = scmp.ne.s32.totalorder %s2006_s23, %s1591_s30  ;;  %s1595_s29 = sshll.u32 %s1699_s16, 4  ;;  %s1596_s29 = int_to_ptr.vmem [resolvable:$false] %s1595_s29 }
 0x387   : > { %s1597_s27 = scalar_lea.vmem %s1596_s29, 256  ;;  %p1598_p9 = scmp.lt.s32.totalorder %s2006_s23, %s1596_s29 }
 0x388   : > { %p1593_p10 = pnand %p1592_p3, %p1851_p5  ;;  %p1599_p13 = scmp.lt.s32.totalorder %s1597_s27, %s1591_s30 }
 0x389   : > { %s2004_s22 = scalar_lea.hbm %s2093_s21, %s1189_s2 }
 0x38a   : > { %p1594_p11 = pneg %p1593_p10  ;;  %p1600_p2 = por %p1599_p13, %p1598_p9 }
 0x38c   : > { %p1601_p4 = pnand %p1600_p2, %p1594_p11 }
 0x436   : > { %v933_v2 = vpop.f32.mrf.mxu1 }
 0x437   : > { %v934_v3 = vadd.f32 %v1185_v1, %v933_v2 }
 0x438   : > { %v1294_v4 = vpop.f32.mrf.mxu1 }
 0x439   : > { %939 = vst [vmem:[%s477_s6] sm:$0xff] %v934_v3 }
 0x43a   : > { %v936_v5 = vpop.f32.mrf.mxu1 }
 0x43b   : > { %1604 = shalt.err (!%p1601_p4)
}
 0x43c   : > { %s1605_s2 = scalar_lea.hbm %s2004_s22, 128  ;;  %s1609_s9 = scalar_lea.hbm %s2093_s21, 256 }
 0x43d   : > { %p1606_p1 = scmp.ne.s32.totalorder %s2004_s22, %s1605_s2  ;;  %p1610_p6 = scmp.lt.s32.totalorder %s2004_s22, %s2093_s21 }
 0x43e   : > { %p1611_p12 = scmp.lt.s32.totalorder %s1609_s9, %s1605_s2 }
 0x43f   : > { %p1607_p8 = pnand %p1606_p1, %p1851_p5 }
 0x440   : > { %p1612_p0 = por %p1611_p12, %p1610_p6 }
 0x441   : > { %p1608_p7 = pneg %p1607_p8 }
 0x443   : > { %p1613_p3 = pnand %p1612_p0, %p1608_p7 }
 0x445   : > { %1616 = shalt.err (!%p1613_p3)
}
 0x446   : > { %1312 = dma.vmem_to_hbm [thread:$0]  (%p1851_p5), %s2006_s23, 128, %s2004_s22, %s942_s28   ;;  %v1295_v6 = vpop.f32.mrf.mxu1 }
 0x447 PF: > { %s2094_s24 = sld [smem:[#allocation22_spill]]  ;;  %p2097_p11 = scmp.ge.s32.totalorder %s1687_s18, 2 }
 0x448   : > { %s2095_s0 = sld [smem:[#allocation23_spill]] }
 0x44d   : > { %s987_s6 = sand.u32 1, %s2094_s24  }
 0x44e   : > { %p2096_p10 = scmp.ne.s32.totalorder %s2095_s0, 0  ;;  %s988_s11 = scalar_lea.sflag [#allocation6], %s987_s6 }
 0x450   : > { %p1334_p9 = pnand %p2097_p11, %p2096_p10 }
 0x452   : > { %p1335_p13 = pneg %p1334_p9 }
 0x454   : > { %1658 = dma.done.wait (%p1335_p13), %s988_s11, 128  }
 0x455   : > { %1660 = vsyncadd (%p1335_p13), %s988_s11, 4294967168  ;;  %s997_s19 = scalar_lea.sflag [#allocation15], %s987_s6 }
 0x456   : > { %1662 = dma.done.wait (%p1335_p13), %s997_s19, 128  }
 0x457   : > { %1664 = vsyncadd (%p1335_p13), %s997_s19, 4294967168  ;;  %s34_s18 = sadd.s32 1, %s1687_s18   ;;  %s2098_s26 = sld [smem:[#allocation24_spill]] }
 0x458   : > { %p31_p2 = scmp.ge.s32.totalorder %s34_s18, 4   ;;  %s2099_s13 = smov %s1671_s14 }
 0x459   : > { %s2100_s14 = smov %s1675_s15  ;;  %s2101_s15 = smov %s1863_s20 }
 0x45a   : > { %s2102_s16 = smov %s1683_s17  ;;  %33 = sbr.rel (!%p31_p2) target bundleno = 17 (0x11), region = 147 }
 0x45d   : > { %s2103_s17 = smov %s2098_s26 }
 0x45f   :  { %1002 = vsyncpa [#allocation5], 1 }
 0x460   :  { %1004 = vsyncpa [#allocation5 + $0x1], 1 }
 0x461   :  { %1005 = vsyncpa [#allocation8], 1 }
 0x462   :  { %1007 = vsyncpa [#allocation8 + $0x1], 1 }
 0x463   :  { %1008 = vsyncpa [#allocation11], 1 }
 0x464   :  { %1009 = vsyncpa [#allocation6], 1 }
 0x465   :  { %1011 = vsyncpa [#allocation6 + $0x1], 1 }
 0x466   :  { %1012 = vsyncpa [#allocation15], 1 }
 0x467   :  { %1014 = vsyncpa [#allocation15 + $0x1], 1 }

</bundles_post_ra>
